<compile_context>
chip_gen: v6e
topology: v6e:2x2x1
jax: 0.10.0
libtpu: 0.0.40
codegen_flags: <defaults>
</compile_context>

<pallas_src>
import functools

import jax
import jax.numpy as jnp
from jax import lax
from jax.experimental import pallas as pl
from jax.experimental.pallas import tpu as pltpu

NEG_INF = -3.0e38


def _round_up(x, m):
    return (x + m - 1) // m * m


def _choose_tk(din128, cap):
    """Largest multiple of 128 that divides din128 and is <= cap."""
    g = din128 // 128
    best = 128
    for d in range(1, g + 1):
        if g % d == 0 and d * 128 <= cap:
            best = d * 128
    return best


def _head_epilogue(head, *, ncl, nun, sparsity, inv_T):
    """sigmoid((.)/T) on enc1 columns + kWTA on enc2 columns.

    `head` is the lane-aligned (bb, round_up(nun+ncl,128)) f32 window of the
    fused output slab; columns >= nun+ncl (possibly leading mu columns) pass
    through unchanged.
    """
    ew = head.shape[1]
    ew2 = min(_round_up(nun, 128), ew)              # aligned kWTA window

    col = lax.broadcasted_iota(jnp.int32, head.shape, 1)   # hoisted, reused
    is_e2 = col < nun
    is_enc1 = (col >= nun) & (col < nun + ncl)

    # exact sigmoid: EUP exp + EUP reciprocal, only over the small window
    sig = pl.reciprocal(1.0 + jnp.exp(-head * inv_T))

    # kWTA threshold: k-th largest per row among the first `nun` columns
    # (duplicate-exact remove-first-occurrence loop, static unroll).
    e2col = col[:, 0:ew2]
    work = jnp.where(e2col < nun, head[:, 0:ew2], NEG_INF)
    for _ in range(sparsity - 1):
        row_max = jnp.max(work, axis=1, keepdims=True)
        first = jnp.min(jnp.where(work >= row_max, e2col, ew2),
                        axis=1, keepdims=True)
        work = jnp.where(e2col == first, NEG_INF, work)
    topval = jnp.max(work, axis=1, keepdims=True)   # k-th largest per row

    out = jnp.where(is_enc1, sig, head)             # mu cols pass through
    out = jnp.where(is_e2 & (head < topval), 0.0, out)
    return out


def _pcbm_kernel_resident(p_ref, w_ref, b_ref, out_ref, *,
                          ncl, nun, sparsity, inv_T, ew):
    """Single-K-step path: fused weight resident in VMEM, no accumulator."""
    acc = jnp.dot(p_ref[...], w_ref[...],
                  preferred_element_type=jnp.float32) + b_ref[...]
    out_ref[...] = acc                               # mu/logvar final here
    out_ref[:, 0:ew] = _head_epilogue(
        acc[:, 0:ew], ncl=ncl, nun=nun, sparsity=sparsity, inv_T=inv_T)


def _pcbm_kernel_tiled(p_ref, w_ref, b_ref, out_ref, *,
                       ncl, nun, sparsity, inv_T, ew):
    """K-tiled path: accumulate directly into the f32 out_ref (no scratch)."""
    k = pl.program_id(1)

    @pl.when(k == 0)
    def _():
        out_ref[...] = jnp.broadcast_to(b_ref[...], out_ref.shape)

    out_ref[...] += jnp.dot(p_ref[...], w_ref[...],
                            preferred_element_type=jnp.float32)

    @pl.when(k == pl.num_programs(1) - 1)
    def _():
        out_ref[:, 0:ew] = _head_epilogue(
            out_ref[:, 0:ew], ncl=ncl, nun=nun, sparsity=sparsity, inv_T=inv_T)


def pack_pcbm_params(params, *, latent_dim):
    """One-time (load-time) packing: [enc2 | enc1 | mu | logvar | pad] -> bf16."""
    w1, b1 = params["enc1_original"]                 # (din, ncl), (1, ncl)
    wmu, bmu = params["dense_mu"]                    # (din, L*ncl)
    wlv, blv = params["dense_logvar"]
    w2, b2 = params["enc2"]                          # (din, nun)
    din, ncl = w1.shape
    nun = w2.shape[1]
    n_total = nun + ncl + 2 * latent_dim * ncl
    din128 = _round_up(din, 128)                     # pad K to 128 only
    n_pad = _round_up(n_total, 128)                  # lane-dense output slab

    w_cat = jnp.concatenate([w2, w1, wmu, wlv], axis=1)
    w_cat = jnp.pad(w_cat, ((0, din128 - din), (0, n_pad - n_total)))
    w_cat = w_cat.astype(jnp.bfloat16)
    b_cat = jnp.concatenate([b2, b1, bmu, blv], axis=1)
    b_cat = jnp.pad(b_cat, ((0, 0), (0, n_pad - n_total))).astype(jnp.float32)
    return {"w": w_cat, "b": b_cat, "din": din, "ncl": ncl, "nun": nun,
            "latent_dim": latent_dim, "n_total": n_total}


def pcbm_forward(x, packed, *, sparsity, T=2.5, force_tk=None):
    B = x.shape[0]
    w_cat, b_cat = packed["w"], packed["b"]
    din, ncl, nun = packed["din"], packed["ncl"], packed["nun"]
    L = packed["latent_dim"]
    n_total = packed["n_total"]
    din128, n_pad = w_cat.shape
    assert sparsity <= nun, "kWTA sparsity must be <= #unknown concepts"

    # --- generation-aware budgets (v5e/v6e: 128 MiB VMEM, v7x: 64 MiB) ---
    try:
        vmem_phys = int(getattr(pltpu.get_tpu_info(),
                                "vmem_capacity_bytes", 64 * 1024 * 1024))
    except Exception:
        vmem_phys = 64 * 1024 * 1024
    vmem_limit = min(vmem_phys * 3 // 4, 100 * 1024 * 1024)   # keep headroom
    resident_cap = vmem_phys // 4              # fused-W resident budget
    tk_cap = 2048 if vmem_phys >= 100 * 1024 * 1024 else 1024

    # --- batch tiling: <=128 rows (vreg pressure); >=2 blocks when B > 8 so
    #     the "parallel" axis feeds the second v7x TensorCore ---
    if B <= 8:
        bb = _round_up(B, 8)
    else:
        bb = min(128, _round_up(pl.cdiv(B, 2), 8))
    b_pad = _round_up(B, bb)
    nb = b_pad // bb

    # --- K tiling: collapse the K grid if the fused W fits resident ---
    w_bytes = din128 * n_pad * 2
    if force_tk is not None:
        assert din128 % force_tk == 0
        tk = force_tk
    elif w_bytes <= resident_cap:
        tk = din128                             # single K step, resident W
    else:
        tk = _choose_tk(din128, tk_cap)         # divides K: no extra zero-pad
    nk = din128 // tk

    # activations: single reshape + bf16 cast + pad
    p = jnp.pad(x.reshape(B, -1).astype(jnp.bfloat16),
                ((0, b_pad - B), (0, din128 - din)))

    ew = min(_round_up(nun + ncl, 128), n_pad)  # lane-aligned epilogue window
    inv_T = 1.0 / T

    cost = pl.CostEstimate(
        flops=2 * b_pad * din128 * n_pad,
        transcendentals=b_pad * ew,
        bytes_accessed=(p.size * 2 + w_cat.size * 2 * (1 if nk == 1 else nb)
                        + b_cat.size * 4 + b_pad * n_pad * 4),
    )

    if nk == 1:
        kern = functools.partial(_pcbm_kernel_resident, ncl=ncl, nun=nun,
                                 sparsity=sparsity, inv_T=inv_T, ew=ew)
        grid = (nb,)
        in_specs = [pl.BlockSpec((bb, din128), lambda b: (b, 0)),     # p
                    pl.BlockSpec((din128, n_pad), lambda b: (0, 0)),  # resident W
                    pl.BlockSpec((1, n_pad), lambda b: (0, 0))]       # bias
        out_specs = pl.BlockSpec((bb, n_pad), lambda b: (b, 0))
        dims = ("parallel",)
    else:
        kern = functools.partial(_pcbm_kernel_tiled, ncl=ncl, nun=nun,
                                 sparsity=sparsity, inv_T=inv_T, ew=ew)
        grid = (nb, nk)
        in_specs = [pl.BlockSpec((bb, tk), lambda b, k: (b, k)),      # p
                    pl.BlockSpec((tk, n_pad), lambda b, k: (k, 0)),   # W tile
                    pl.BlockSpec((1, n_pad), lambda b, k: (0, 0))]    # bias
        out_specs = pl.BlockSpec((bb, n_pad), lambda b, k: (b, 0))
        dims = ("parallel", "arbitrary")

    out = pl.pallas_call(
        kern,
        out_shape=jax.ShapeDtypeStruct((b_pad, n_pad), jnp.float32),
        grid_spec=pltpu.PrefetchScalarGridSpec(
            num_scalar_prefetch=0, grid=grid,
            in_specs=in_specs, out_specs=out_specs),
        compiler_params=pltpu.CompilerParams(
            dimension_semantics=dims, vmem_limit_bytes=vmem_limit),
        cost_estimate=cost,
    )(p, w_cat, b_cat)

    # --- wrapper-side slicing of the lane-dense slab (glue only) ---
    out = out[:B]
    enc2 = out[:, 0:nun].reshape(B, nun, 1)
    enc1 = out[:, nun:nun + ncl]
    mu = out[:, nun + ncl:nun + ncl + L * ncl].reshape(B, ncl, L)
    logvar = out[:, nun + ncl + L * ncl:n_total].reshape(B, ncl, L)
    return enc1, enc2, [mu, logvar]


def _init_linear(key, fan_in, fan_out):
    """Deterministic init mimicking nn.Linear's uniform(-1/sqrt(fan_in), ...)."""
    kw, kb = jax.random.split(key)
    bound = 1.0 / jnp.sqrt(jnp.float32(fan_in))
    w = jax.random.uniform(kw, (fan_in, fan_out), jnp.float32, -bound, bound)
    b = jax.random.uniform(kb, (1, fan_out), jnp.float32, -bound, bound)
    return w, b


if __name__ == "__main__":
    # Small shapes consistent with the module (NCHW input flattened to din).
    B, C, H, W = 2, 4, 16, 16            # din = 1024
    din = C * H * W
    nconcept_labeled = 21                # fixed by module (positives: (1,21,16))
    nconcept = 37                        # -> 16 unknown concepts
    latent_dim = 16
    sparsity = 4

    key = jax.random.PRNGKey(0)
    kx, k1, k2, k3, k4 = jax.random.split(key, 5)
    x = jax.random.normal(kx, (B, C, H, W), jnp.float32)

    params = {
        "enc1_original": _init_linear(k1, din, nconcept_labeled),
        "dense_mu": _init_linear(k2, din, latent_dim * nconcept_labeled),
        "dense_logvar": _init_linear(k3, din, latent_dim * nconcept_labeled),
        "enc2": _init_linear(k4, din, nconcept - nconcept_labeled),
    }

    packed = pack_pcbm_params(params, latent_dim=latent_dim)

    # Resident-weight (single K step) path.
    enc1, enc2, (mu, logvar) = pcbm_forward(x, packed, sparsity=sparsity)
    jax.block_until_ready((enc1, enc2, mu, logvar))

    # K-tiled path (forced) — must give identical semantics.
    enc1_t, enc2_t, (mu_t, logvar_t) = pcbm_forward(
        x, packed, sparsity=sparsity, force_tk=512)
    jax.block_until_ready((enc1_t, enc2_t, mu_t, logvar_t))

    # Pure-JAX reference (same bf16-cast operands, f32 accumulation).
    def bf(a):
        return a.astype(jnp.bfloat16).astype(jnp.float32)

    dot = functools.partial(jnp.dot, precision=lax.Precision.HIGHEST)
    p_ref = bf(x.reshape(B, -1))
    ncl, nun, L = nconcept_labeled, nconcept - nconcept_labeled, latent_dim
    ref1 = jax.nn.sigmoid((dot(p_ref, bf(params["enc1_original"][0]))
                           + params["enc1_original"][1]) / 2.5)
    ref_mu = (dot(p_ref, bf(params["dense_mu"][0]))
              + params["dense_mu"][1]).reshape(B, ncl, L)
    ref_lv = (dot(p_ref, bf(params["dense_logvar"][0]))
              + params["dense_logvar"][1]).reshape(B, ncl, L)
    e2 = dot(p_ref, bf(params["enc2"][0])) + params["enc2"][1]
    topv = lax.top_k(e2, sparsity)[0][:, -1:]
    ref2 = ((e2 >= topv).astype(e2.dtype) * e2)[:, :, None]

    checks = [(enc1, ref1, "enc1"), (enc2, ref2, "enc2"),
              (mu, ref_mu, "mu"), (logvar, ref_lv, "logvar"),
              (enc1_t, ref1, "enc1_tiled"), (enc2_t, ref2, "enc2_tiled"),
              (mu_t, ref_mu, "mu_tiled"), (logvar_t, ref_lv, "logvar_tiled")]
    for got, want, name in checks:
        err = float(jnp.max(jnp.abs(got - want)))
        assert err <= 2e-3, (name, err)

    print("KERNEL_OK")
</pallas_src>

<mosaic_0001>
module attributes {stable_mosaic.version = 11 : i64} {
  func.func @_pcbm_kernel_resident(%arg0: i32, %arg1: memref<8x1024xbf16, #tpu.memory_space<vmem>>, %arg2: memref<1024x768xbf16, #tpu.memory_space<vmem>>, %arg3: memref<1x768xf32, #tpu.memory_space<vmem>>, %arg4: memref<8x768xf32, #tpu.memory_space<vmem>>) attributes {dimension_semantics = [#tpu.dimension_semantics<parallel>], iteration_bounds = array<i64: 1>, scalar_prefetch = 0 : i64, scratch_operands = 0 : i64, tpu.core_type = #tpu.core_type<tc>, window_params = [{transform_indices = @transform_0, window_bounds = array<i64: 8, 1024>}, {pipeline_mode = #tpu.pipeline_mode<synchronous>, transform_indices = @transform_1, window_bounds = array<i64: 1024, 768>}, {pipeline_mode = #tpu.pipeline_mode<synchronous>, transform_indices = @transform_2, window_bounds = array<i64: 1, 768>}, {transform_indices = @transform_3, window_bounds = array<i64: 8, 768>}]} {
    %c0 = arith.constant 0 : index
    %c0_0 = arith.constant 0 : index
    %0 = vector.load %arg1[%c0, %c0_0] : memref<8x1024xbf16, #tpu.memory_space<vmem>>, vector<8x1024xbf16>
    %c0_1 = arith.constant 0 : index
    %c0_2 = arith.constant 0 : index
    %1 = vector.load %arg2[%c0_1, %c0_2] : memref<1024x768xbf16, #tpu.memory_space<vmem>>, vector<1024x768xbf16>
    %cst = arith.constant dense<0.000000e+00> : vector<8x768xf32>
    %2 = tpu.matmul %0, %1, %cst {dimension_numbers = #tpu.dot_dimension_numbers<[1], [0], [0], [1], [0, 0, 1, 1], [], []>} : vector<8x1024xbf16>, vector<1024x768xbf16>, vector<8x768xf32> -> vector<8x768xf32>
    %c0_3 = arith.constant 0 : index
    %c0_4 = arith.constant 0 : index
    %3 = vector.load %arg3[%c0_3, %c0_4] : memref<1x768xf32, #tpu.memory_space<vmem>>, vector<1x768xf32>
    %4 = vector.broadcast %3 : vector<1x768xf32> to vector<8x768xf32>
    %5 = arith.addf %2, %4 : vector<8x768xf32>
    %c0_5 = arith.constant 0 : index
    %c0_6 = arith.constant 0 : index
    %6 = vector.load %arg4[%c0_5, %c0_6] : memref<8x768xf32, #tpu.memory_space<vmem>>, vector<8x768xf32>
    tpu.vector_store %arg4[%c0_5, %c0_6], %5 {strides = array<i32>} : memref<8x768xf32, #tpu.memory_space<vmem>>, vector<8x768xf32>,
    %7 = vector.extract_strided_slice %5 {offsets = [0, 0], sizes = [8, 128], strides = [1, 1]} : vector<8x768xf32> to vector<8x128xf32>
    %8 = tpu.iota {dimensions = array<i32: 1>} : vector<8x128xi32>
    %c16_i32 = arith.constant 16 : i32
    %9 = vector.broadcast %c16_i32 : i32 to vector<8x128xi32>
    %10 = arith.cmpi slt, %8, %9 : vector<8x128xi32>
    %c16_i32_7 = arith.constant 16 : i32
    %11 = vector.broadcast %c16_i32_7 : i32 to vector<8x128xi32>
    %12 = arith.cmpi sge, %8, %11 : vector<8x128xi32>
    %c37_i32 = arith.constant 37 : i32
    %13 = vector.broadcast %c37_i32 : i32 to vector<8x128xi32>
    %14 = arith.cmpi slt, %8, %13 : vector<8x128xi32>
    %15 = arith.andi %12, %14 : vector<8x128xi1>
    %cst_8 = arith.constant 0.000000e+00 : f32
    %16 = vector.broadcast %cst_8 : f32 to vector<8x128xf32>
    %17 = arith.subf %16, %7 : vector<8x128xf32>
    %cst_9 = arith.constant 4.000000e-01 : f32
    %18 = vector.broadcast %cst_9 : f32 to vector<8x128xf32>
    %19 = arith.mulf %17, %18 : vector<8x128xf32>
    %20 = math.exp %19 : vector<8x128xf32>
    %cst_10 = arith.constant 1.000000e+00 : f32
    %21 = vector.broadcast %cst_10 : f32 to vector<8x128xf32>
    %22 = arith.addf %21, %20 : vector<8x128xf32>
    %23 = tpu.reciprocal %22 : vector<8x128xf32> -> vector<8x128xf32>
    %c16_i32_11 = arith.constant 16 : i32
    %24 = vector.broadcast %c16_i32_11 : i32 to vector<8x128xi32>
    %25 = arith.cmpi slt, %8, %24 : vector<8x128xi32>
    %cst_12 = arith.constant -3.000000e+38 : f32
    %26 = vector.broadcast %cst_12 : f32 to vector<8x128xf32>
    %27 = arith.select %25, %7, %26 : vector<8x128xi1>, vector<8x128xf32>
    %cst_13 = arith.constant dense<0xFF800000> : vector<8xf32>
    %28 = vector.multi_reduction <maximumf>, %27, %cst_13 [1] : vector<8x128xf32> to vector<8xf32>
    %29 = vector.shape_cast %28 : vector<8xf32> to vector<8x1xf32>
    %30 = vector.broadcast %29 : vector<8x1xf32> to vector<8x128xf32>
    %31 = arith.cmpf oge, %27, %30 : vector<8x128xf32>
    %c128_i32 = arith.constant 128 : i32
    %32 = vector.broadcast %c128_i32 : i32 to vector<8x128xi32>
    %33 = arith.select %31, %8, %32 : vector<8x128xi1>, vector<8x128xi32>
    %cst_14 = arith.constant dense<2147483647> : vector<8xi32>
    %34 = vector.multi_reduction <minsi>, %33, %cst_14 [1] : vector<8x128xi32> to vector<8xi32>
    %35 = vector.shape_cast %34 : vector<8xi32> to vector<8x1xi32>
    %36 = vector.broadcast %35 : vector<8x1xi32> to vector<8x128xi32>
    %37 = arith.cmpi eq, %8, %36 : vector<8x128xi32>
    %cst_15 = arith.constant -3.000000e+38 : f32
    %38 = vector.broadcast %cst_15 : f32 to vector<8x128xf32>
    %39 = arith.select %37, %38, %27 : vector<8x128xi1>, vector<8x128xf32>
    %cst_16 = arith.constant dense<0xFF800000> : vector<8xf32>
    %40 = vector.multi_reduction <maximumf>, %39, %cst_16 [1] : vector<8x128xf32> to vector<8xf32>
    %41 = vector.shape_cast %40 : vector<8xf32> to vector<8x1xf32>
    %42 = vector.broadcast %41 : vector<8x1xf32> to vector<8x128xf32>
    %43 = arith.cmpf oge, %39, %42 : vector<8x128xf32>
    %c128_i32_17 = arith.constant 128 : i32
    %44 = vector.broadcast %c128_i32_17 : i32 to vector<8x128xi32>
    %45 = arith.select %43, %8, %44 : vector<8x128xi1>, vector<8x128xi32>
    %cst_18 = arith.constant dense<2147483647> : vector<8xi32>
    %46 = vector.multi_reduction <minsi>, %45, %cst_18 [1] : vector<8x128xi32> to vector<8xi32>
    %47 = vector.shape_cast %46 : vector<8xi32> to vector<8x1xi32>
    %48 = vector.broadcast %47 : vector<8x1xi32> to vector<8x128xi32>
    %49 = arith.cmpi eq, %8, %48 : vector<8x128xi32>
    %cst_19 = arith.constant -3.000000e+38 : f32
    %50 = vector.broadcast %cst_19 : f32 to vector<8x128xf32>
    %51 = arith.select %49, %50, %39 : vector<8x128xi1>, vector<8x128xf32>
    %cst_20 = arith.constant dense<0xFF800000> : vector<8xf32>
    %52 = vector.multi_reduction <maximumf>, %51, %cst_20 [1] : vector<8x128xf32> to vector<8xf32>
    %53 = vector.shape_cast %52 : vector<8xf32> to vector<8x1xf32>
    %54 = vector.broadcast %53 : vector<8x1xf32> to vector<8x128xf32>
    %55 = arith.cmpf oge, %51, %54 : vector<8x128xf32>
    %c128_i32_21 = arith.constant 128 : i32
    %56 = vector.broadcast %c128_i32_21 : i32 to vector<8x128xi32>
    %57 = arith.select %55, %8, %56 : vector<8x128xi1>, vector<8x128xi32>
    %cst_22 = arith.constant dense<2147483647> : vector<8xi32>
    %58 = vector.multi_reduction <minsi>, %57, %cst_22 [1] : vector<8x128xi32> to vector<8xi32>
    %59 = vector.shape_cast %58 : vector<8xi32> to vector<8x1xi32>
    %60 = vector.broadcast %59 : vector<8x1xi32> to vector<8x128xi32>
    %61 = arith.cmpi eq, %8, %60 : vector<8x128xi32>
    %cst_23 = arith.constant -3.000000e+38 : f32
    %62 = vector.broadcast %cst_23 : f32 to vector<8x128xf32>
    %63 = arith.select %61, %62, %51 : vector<8x128xi1>, vector<8x128xf32>
    %cst_24 = arith.constant dense<0xFF800000> : vector<8xf32>
    %64 = vector.multi_reduction <maximumf>, %63, %cst_24 [1] : vector<8x128xf32> to vector<8xf32>
    %65 = vector.shape_cast %64 : vector<8xf32> to vector<8x1xf32>
    %66 = arith.select %15, %23, %7 : vector<8x128xi1>, vector<8x128xf32>
    %67 = vector.broadcast %65 : vector<8x1xf32> to vector<8x128xf32>
    %68 = arith.cmpf olt, %7, %67 : vector<8x128xf32>
    %69 = arith.andi %10, %68 : vector<8x128xi1>
    %cst_25 = arith.constant 0.000000e+00 : f32
    %70 = vector.broadcast %cst_25 : f32 to vector<8x128xf32>
    %71 = arith.select %69, %70, %66 : vector<8x128xi1>, vector<8x128xf32>
    %c0_26 = arith.constant 0 : index
    %c0_27 = arith.constant 0 : index
    %72 = vector.load %arg4[%c0_26, %c0_27] : memref<8x768xf32, #tpu.memory_space<vmem>>, vector<8x128xf32>
    tpu.vector_store %arg4[%c0_26, %c0_27], %71 {strides = array<i32>} : memref<8x768xf32, #tpu.memory_space<vmem>>, vector<8x128xf32>,
    return
  }
  func.func @transform_0(%arg0: i32) -> (i32, i32) {
    %c0_i32 = arith.constant 0 : i32
    %c0_i32_0 = arith.constant 0 : i32
    return %arg0, %c0_i32 : i32, i32
  }
  func.func @transform_1(%arg0: i32) -> (i32, i32) {
    %c0_i32 = arith.constant 0 : i32
    %c0_i32_0 = arith.constant 0 : i32
    %c0_i32_1 = arith.constant 0 : i32
    return %c0_i32, %c0_i32_0 : i32, i32
  }
  func.func @transform_2(%arg0: i32) -> (i32, i32) {
    %c0_i32 = arith.constant 0 : i32
    %c0_i32_0 = arith.constant 0 : i32
    %c0_i32_1 = arith.constant 0 : i32
    return %c0_i32, %c0_i32_0 : i32, i32
  }
  func.func @transform_3(%arg0: i32) -> (i32, i32) {
    %c0_i32 = arith.constant 0 : i32
    %c0_i32_0 = arith.constant 0 : i32
    return %arg0, %c0_i32 : i32, i32
  }
}

</mosaic_0001>

<bundles_post_ra>
// kernel: tpu_custom_call.1
= control target key start
LH: loop header
LB: loop body
LE: loop exit
PB: predicated region body
PF: predicated region fallthrough
CT: control target
= control target key end

     0   :  { %8 = vsyncpa [#allocation3], 0  ;;  %s4234_s0 = inlined_call_operand.hbm [shape: bf16[8,1024], index: 0, kind: input, shape index: {}]   ;;  %s4235_s1 = inlined_call_operand.hbm [shape: bf16[1024,768], index: 1, kind: input, shape index: {}]   ;;  %s4236_s2 = inlined_call_operand.hbm [shape: f32[1,768], index: 2, kind: input, shape index: {}]   ;;  %s4237_s3 = inlined_call_operand.hbm [shape: f32[8,768], index: 3, kind: output, shape index: {}]  }
   0x1   :  { %9 = vsyncpa [#allocation6], 0 }
   0x2   :  { %10 = vsyncpa [#allocation4], 0  ;;  %s4087_s12 = smov [#allocation5]  }
   0x3   :  { %s26_s13 = sshll.u32 %s4087_s12, 4  ;;  %s27_s13 = int_to_ptr.vmem [resolvable:$true] %s26_s13 }
   0x4   :  { %s4009_s14 = scalar_lea.vmem %s27_s13, 49152  ;;  %p4014_p1 = scmp.lt.s32.totalorder %s27_s13, %s27_s13 }
   0x5   :  { %p4010_p0 = scmp.ne.s32.totalorder %s27_s13, %s4009_s14  ;;  %p4015_p2 = scmp.lt.s32.totalorder %s4009_s14, %s4009_s14 }
   0x7   :  { %p4016_p3 = por %p4015_p2, %p4014_p1 }
   0x9   :  { %p4017_p4 = pnand %p4016_p3, %p4010_p0 }
   0xb   :  { %4020 = shalt.err (!%p4017_p4)
}
   0xc   :  { %s4088_s15 = smov 384   ;;  %s4089_s16 = smov 24  }
   0xd   :  { %32 = dma.hbm_to_vmem [thread:$0]  %s4235_s1, 49152, %s27_s13, [#allocation6], %s4088_s15, %s4088_s15, %s4089_s16  }
   0xe   :  { %s4090_s19 = smov [#allocation2]   ;;  %s4091_s21 = smov [#allocation7]  }
   0xf   :  { %s17_s20 = sshll.u32 %s4090_s19, 4  ;;  %s39_s22 = sshll.u32 %s4091_s21, 4  ;;  %s18_s20 = int_to_ptr.vmem [resolvable:$true] %s17_s20  ;;  %s40_s22 = int_to_ptr.vmem [resolvable:$true] %s39_s22 }
  0x10   :  { %s4029_s23 = scalar_lea.vmem %s18_s20, 512  ;;  %p4034_p6 = scmp.lt.s32.totalorder %s18_s20, %s18_s20 }
  0x11   :  { %p4030_p5 = scmp.ne.s32.totalorder %s18_s20, %s4029_s23  ;;  %p4035_p7 = scmp.lt.s32.totalorder %s4029_s23, %s4029_s23 }
  0x13   :  { %p4036_p8 = por %p4035_p7, %p4034_p6 }
  0x15   :  { %p4037_p9 = pnand %p4036_p8, %p4030_p5 }
  0x17   :  { %4040 = shalt.err (!%p4037_p9)
}
  0x18   :  { %20 = dma.hbm_to_vmem [thread:$0]  %s4234_s0, 512, %s18_s20, [#allocation3]  }
  0x19   :  { %s4049_s26 = scalar_lea.vmem %s40_s22, 96  ;;  %p4054_p11 = scmp.lt.s32.totalorder %s40_s22, %s40_s22 }
  0x1a   :  { %p4050_p10 = scmp.ne.s32.totalorder %s40_s22, %s4049_s26  ;;  %p4055_p12 = scmp.lt.s32.totalorder %s4049_s26, %s4049_s26 }
  0x1c   :  { %p4056_p13 = por %p4055_p12, %p4054_p11 }
  0x1e   :  { %p4057_p0 = pnand %p4056_p13, %p4050_p10 }
  0x20   :  { %4060 = shalt.err (!%p4057_p0)
}
  0x21   :  { %42 = dma.hbm_to_vmem [thread:$0]  %s4236_s2, 96, %s40_s22, [#allocation6]  }
  0x22   :  { %4081 = dma.done.wait [#allocation3], 512  }
  0x23   :  { %4082 = vsyncadd [#allocation3], 4294966784 }
  0x24   :  { %4083 = dma.done.wait [#allocation6], 49248  }
  0x25   :  { %4084 = vsyncadd [#allocation6], 4294918048  ;;  %v3412_v0 = vld [vmem:[#allocation5 + $0x154] ss:$24 sps:$4 sm:$0xff]   ;;  %v3416_v2 = vld [vmem:[#allocation5 + $0x150] ss:$24 sps:$4 sm:$0xff]  }
  0x26   :  { %v3414_v1 = vld [vmem:[#allocation5 + $0x454] ss:$24 sps:$4 sm:$0xff]   ;;  %2420 = vmatprep.subr.bf16.mxu0 %v3412_v0  ;;  %v3417_v3 = vld [vmem:[#allocation5 + $0x450] ss:$24 sps:$4 sm:$0xff]   ;;  %v3418_v4 = vld [vmem:[#allocation5 + $0x124] ss:$24 sps:$4 sm:$0xff]  }
  0x27   :  { %2461 = vmatprep.subr.bf16.mxu1 %v3414_v1  ;;  %2421 = vmatpush1.bf16.msra.mxu0 %v3416_v2  ;;  %v3420_v5 = vld [vmem:[#allocation5 + $0x424] ss:$24 sps:$4 sm:$0xff]   ;;  %v3422_v6 = vld [vmem:[#allocation5 + $0x120] ss:$24 sps:$4 sm:$0xff]   ;;  %v3424_v8 = vld [vmem:[#allocation5 + $0xf4] ss:$24 sps:$4 sm:$0xff]  }
  0x28   :  { %2462 = vmatpush1.bf16.msra.mxu1 %v3417_v3  ;;  %2422 = vmatprep.subr.bf16.mxu0 %v3418_v4  ;;  %v3423_v7 = vld [vmem:[#allocation5 + $0x420] ss:$24 sps:$4 sm:$0xff]   ;;  %v3426_v9 = vld [vmem:[#allocation5 + $0x3f4] ss:$24 sps:$4 sm:$0xff]   ;;  %v3428_v10 = vld [vmem:[#allocation5 + $0xf0] ss:$24 sps:$4 sm:$0xff]  }
  0x29   :  { %2463 = vmatprep.subr.bf16.mxu1 %v3420_v5  ;;  %v3429_v11 = vld [vmem:[#allocation5 + $0x3f0] ss:$24 sps:$4 sm:$0xff]   ;;  %v3430_v12 = vld [vmem:[#allocation5 + $0xc4] ss:$24 sps:$4 sm:$0xff]   ;;  %v3434_v14 = vld [vmem:[#allocation5 + $0xc0] ss:$24 sps:$4 sm:$0xff]  }
  0x2a   :  { %v3432_v13 = vld [vmem:[#allocation5 + $0x3c4] ss:$24 sps:$4 sm:$0xff]   ;;  %v3435_v15 = vld [vmem:[#allocation5 + $0x3c0] ss:$24 sps:$4 sm:$0xff]   ;;  %v3436_v16 = vld [vmem:[#allocation5 + $0x94] ss:$24 sps:$4 sm:$0xff]  }
  0x2b   :  { %2423 = vmatpush1.bf16.msra.mxu0 %v3422_v6  ;;  %v3438_v17 = vld [vmem:[#allocation5 + $0x394] ss:$24 sps:$4 sm:$0xff]   ;;  %v3440_v18 = vld [vmem:[#allocation5 + $0x90] ss:$24 sps:$4 sm:$0xff]   ;;  %v3442_v20 = vld [vmem:[#allocation5 + $0x64] ss:$24 sps:$4 sm:$0xff]  }
  0x2c   :  { %2464 = vmatpush1.bf16.msra.mxu1 %v3423_v7  ;;  %2424 = vmatprep.subr.bf16.mxu0 %v3424_v8  ;;  %v3441_v19 = vld [vmem:[#allocation5 + $0x390] ss:$24 sps:$4 sm:$0xff]   ;;  %v3444_v21 = vld [vmem:[#allocation5 + $0x364] ss:$24 sps:$4 sm:$0xff]   ;;  %v3446_v22 = vld [vmem:[#allocation5 + $0x60] ss:$24 sps:$4 sm:$0xff]  }
  0x2d   :  { %2465 = vmatprep.subr.bf16.mxu1 %v3426_v9  ;;  %v3447_v23 = vld [vmem:[#allocation5 + $0x360] ss:$24 sps:$4 sm:$0xff]   ;;  %v3448_v24 = vld [vmem:[#allocation5 + $0x34] ss:$24 sps:$4 sm:$0xff]   ;;  %v3452_v26 = vld [vmem:[#allocation5 + $0x30] ss:$24 sps:$4 sm:$0xff]  }
  0x2e   :  { %v3450_v25 = vld [vmem:[#allocation5 + $0x334] ss:$24 sps:$4 sm:$0xff]   ;;  %v3453_v27 = vld [vmem:[#allocation5 + $0x330] ss:$24 sps:$4 sm:$0xff]   ;;  %v3454_v28 = vld [vmem:[#allocation5 + $0x4] ss:$24 sps:$4 sm:$0xff]  }
  0x2f   :  { %2425 = vmatpush1.bf16.msra.mxu0 %v3428_v10  ;;  %v3456_v29 = vld [vmem:[#allocation5 + $0x304] ss:$24 sps:$4 sm:$0xff]   ;;  %v3458_v30 = vld [vmem:[#allocation5] ss:$24 sps:$4 sm:$0xff]   ;;  %v3460_v32 = vld [vmem:[#allocation5 + $0x2d4] ss:$24 sps:$4 sm:$0xff]  }
  0x30   :  { %2466 = vmatpush1.bf16.msra.mxu1 %v3429_v11  ;;  %2426 = vmatprep.subr.bf16.mxu0 %v3430_v12  ;;  %v3459_v31 = vld [vmem:[#allocation5 + $0x300] ss:$24 sps:$4 sm:$0xff]   ;;  %v3462_v33 = vld [vmem:[#allocation5 + $0x5d4] ss:$24 sps:$4 sm:$0xff]   ;;  %v3464_v34 = vld [vmem:[#allocation5 + $0x2d0] ss:$24 sps:$4 sm:$0xff]  }
  0x31   :  { %2467 = vmatprep.subr.bf16.mxu1 %v3432_v13  ;;  %v3465_v35 = vld [vmem:[#allocation5 + $0x5d0] ss:$24 sps:$4 sm:$0xff]   ;;  %v3466_v36 = vld [vmem:[#allocation5 + $0x2a4] ss:$24 sps:$4 sm:$0xff]   ;;  %v3470_v38 = vld [vmem:[#allocation5 + $0x2a0] ss:$24 sps:$4 sm:$0xff]  }
  0x32   :  { %v3468_v37 = vld [vmem:[#allocation5 + $0x5a4] ss:$24 sps:$4 sm:$0xff]   ;;  %v3471_v39 = vld [vmem:[#allocation5 + $0x5a0] ss:$24 sps:$4 sm:$0xff]   ;;  %v3472_v40 = vld [vmem:[#allocation5 + $0x274] ss:$24 sps:$4 sm:$0xff]  }
  0x33   :  { %2427 = vmatpush1.bf16.msra.mxu0 %v3434_v14  ;;  %v3474_v41 = vld [vmem:[#allocation5 + $0x574] ss:$24 sps:$4 sm:$0xff]   ;;  %v3476_v42 = vld [vmem:[#allocation5 + $0x270] ss:$24 sps:$4 sm:$0xff]   ;;  %v3478_v44 = vld [vmem:[#allocation5 + $0x244] ss:$24 sps:$4 sm:$0xff]  }
  0x34   :  { %2468 = vmatpush1.bf16.msra.mxu1 %v3435_v15  ;;  %2428 = vmatprep.subr.bf16.mxu0 %v3436_v16  ;;  %v3477_v43 = vld [vmem:[#allocation5 + $0x570] ss:$24 sps:$4 sm:$0xff]   ;;  %v3480_v45 = vld [vmem:[#allocation5 + $0x544] ss:$24 sps:$4 sm:$0xff]   ;;  %v3482_v49 = vld [vmem:[#allocation5 + $0x240] ss:$24 sps:$4 sm:$0xff]  }
  0x35   :  { %2469 = vmatprep.subr.bf16.mxu1 %v3438_v17  ;;  %v52_v46 = vld [vmem:[#allocation2] sm:$0xff]  ;;  %v53_v48 = vld [vmem:[#allocation2 + $0x8] sm:$0xff]  ;;  %s4092_s0 = smov [#allocation8]  }
  0x36   :  { %v4122_v47 = vcombine.high %v52_v46, %v52_v46  ;;  %v3483_v50 = vld [vmem:[#allocation5 + $0x540] ss:$24 sps:$4 sm:$0xff]   ;;  %v4124_v51 = vcombine.high %v53_v48, %v53_v48  ;;  %v3484_v52 = vld [vmem:[#allocation5 + $0x214] ss:$24 sps:$4 sm:$0xff]   ;;  %v3488_v54 = vld [vmem:[#allocation5 + $0x210] ss:$24 sps:$4 sm:$0xff]   ;;  %v4128_v6 = vcombine.low %v52_v46, %v52_v46  ;;  %v4130_v7 = vcombine.low %v53_v48, %v53_v48 }
  0x37   :  { %2429 = vmatpush1.bf16.msra.mxu0 %v3440_v18  ;;  %v3486_v53 = vld [vmem:[#allocation5 + $0x514] ss:$24 sps:$4 sm:$0xff]   ;;  %v3489_v55 = vld [vmem:[#allocation5 + $0x510] ss:$24 sps:$4 sm:$0xff]   ;;  %v3490_v56 = vld [vmem:[#allocation5 + $0x1e4] ss:$24 sps:$4 sm:$0xff]  }
  0x38   :  { %2470 = vmatpush1.bf16.msra.mxu1 %v3441_v19  ;;  %2430 = vmatprep.subr.bf16.mxu0 %v3442_v20  ;;  %v3492_v57 = vld [vmem:[#allocation5 + $0x4e4] ss:$24 sps:$4 sm:$0xff]   ;;  %v3494_v58 = vld [vmem:[#allocation5 + $0x1e0] ss:$24 sps:$4 sm:$0xff]   ;;  %v3496_v60 = vld [vmem:[#allocation5 + $0x1b4] ss:$24 sps:$4 sm:$0xff]  }
  0x39   :  { %2471 = vmatprep.subr.bf16.mxu1 %v3444_v21  ;;  %2452 = vmatprep.mubr.bf16.mxu0 %v4122_v47  ;;  %v3495_v59 = vld [vmem:[#allocation5 + $0x4e0] ss:$24 sps:$4 sm:$0xff]   ;;  %v3498_v61 = vld [vmem:[#allocation5 + $0x4b4] ss:$24 sps:$4 sm:$0xff]   ;;  %v3500_v62 = vld [vmem:[#allocation5 + $0x1b0] ss:$24 sps:$4 sm:$0xff]  }
  0x3a   :  { %2493 = vmatprep.mubr.bf16.mxu1 %v4124_v51  ;;  %v3501_v63 = vld [vmem:[#allocation5 + $0x4b0] ss:$24 sps:$4 sm:$0xff]   ;;  %v3502_v0 = vld [vmem:[#allocation5 + $0x184] ss:$24 sps:$4 sm:$0xff]   ;;  %v3506_v2 = vld [vmem:[#allocation5 + $0x180] ss:$24 sps:$4 sm:$0xff]  }
  0x3b   :  { %2431 = vmatpush1.bf16.msra.mxu0 %v3446_v22  ;;  %v3504_v1 = vld [vmem:[#allocation5 + $0x484] ss:$24 sps:$4 sm:$0xff]   ;;  %v3507_v3 = vld [vmem:[#allocation5 + $0x480] ss:$24 sps:$4 sm:$0xff]   ;;  %v3514_v4 = vld [vmem:[#allocation5 + $0x754] ss:$24 sps:$4 sm:$0xff]  }
  0x3c   :  { %2472 = vmatpush1.bf16.msra.mxu1 %v3447_v23  ;;  %2432 = vmatprep.subr.bf16.mxu0 %v3448_v24  ;;  %v3517_v5 = vld [vmem:[#allocation5 + $0xa54] ss:$24 sps:$4 sm:$0xff]   ;;  %v3512_v8 = vld [vmem:[#allocation5 + $0x750] ss:$24 sps:$4 sm:$0xff]   ;;  %v3520_v10 = vld [vmem:[#allocation5 + $0x724] ss:$24 sps:$4 sm:$0xff]  }
  0x3d   :  { %2473 = vmatprep.subr.bf16.mxu1 %v3450_v25  ;;  %v3515_v9 = vld [vmem:[#allocation5 + $0xa50] ss:$24 sps:$4 sm:$0xff]   ;;  %v3523_v11 = vld [vmem:[#allocation5 + $0xa24] ss:$24 sps:$4 sm:$0xff]   ;;  %v3518_v12 = vld [vmem:[#allocation5 + $0x720] ss:$24 sps:$4 sm:$0xff]  }
  0x3e   :  { %v3521_v13 = vld [vmem:[#allocation5 + $0xa20] ss:$24 sps:$4 sm:$0xff]   ;;  %v3526_v14 = vld [vmem:[#allocation5 + $0x6f4] ss:$24 sps:$4 sm:$0xff]   ;;  %v3524_v16 = vld [vmem:[#allocation5 + $0x6f0] ss:$24 sps:$4 sm:$0xff]  }
  0x3f   :  { %2433 = vmatpush1.bf16.msra.mxu0 %v3452_v26  ;;  %v3529_v15 = vld [vmem:[#allocation5 + $0x9f4] ss:$24 sps:$4 sm:$0xff]   ;;  %v3527_v17 = vld [vmem:[#allocation5 + $0x9f0] ss:$24 sps:$4 sm:$0xff]   ;;  %v3532_v18 = vld [vmem:[#allocation5 + $0x6c4] ss:$24 sps:$4 sm:$0xff]  }
  0x40   :  { %2474 = vmatpush1.bf16.msra.mxu1 %v3453_v27  ;;  %2434 = vmatprep.subr.bf16.mxu0 %v3454_v28  ;;  %v3535_v19 = vld [vmem:[#allocation5 + $0x9c4] ss:$24 sps:$4 sm:$0xff]   ;;  %v3530_v20 = vld [vmem:[#allocation5 + $0x6c0] ss:$24 sps:$4 sm:$0xff]   ;;  %v3538_v22 = vld [vmem:[#allocation5 + $0x694] ss:$24 sps:$4 sm:$0xff]  }
  0x41   :  { %2475 = vmatprep.subr.bf16.mxu1 %v3456_v29  ;;  %v3533_v21 = vld [vmem:[#allocation5 + $0x9c0] ss:$24 sps:$4 sm:$0xff]   ;;  %v3541_v23 = vld [vmem:[#allocation5 + $0x994] ss:$24 sps:$4 sm:$0xff]   ;;  %v3536_v24 = vld [vmem:[#allocation5 + $0x690] ss:$24 sps:$4 sm:$0xff]  }
  0x42   :  { %v3539_v25 = vld [vmem:[#allocation5 + $0x990] ss:$24 sps:$4 sm:$0xff]   ;;  %v3544_v26 = vld [vmem:[#allocation5 + $0x664] ss:$24 sps:$4 sm:$0xff]   ;;  %v3542_v28 = vld [vmem:[#allocation5 + $0x660] ss:$24 sps:$4 sm:$0xff]  }
  0x43   :  { %2435 = vmatpush1.bf16.msra.mxu0 %v3458_v30  ;;  %v3547_v27 = vld [vmem:[#allocation5 + $0x964] ss:$24 sps:$4 sm:$0xff]   ;;  %v3545_v29 = vld [vmem:[#allocation5 + $0x960] ss:$24 sps:$4 sm:$0xff]   ;;  %v3550_v30 = vld [vmem:[#allocation5 + $0x634] ss:$24 sps:$4 sm:$0xff]  }
  0x44   :  { %2476 = vmatpush1.bf16.msra.mxu1 %v3459_v31  ;;  %2436 = vmatprep.subr.bf16.mxu0 %v3460_v32  ;;  %v3553_v31 = vld [vmem:[#allocation5 + $0x934] ss:$24 sps:$4 sm:$0xff]   ;;  %v3548_v32 = vld [vmem:[#allocation5 + $0x630] ss:$24 sps:$4 sm:$0xff]   ;;  %v3568_v46 = vld [vmem:[#allocation5 + $0x8a4] ss:$24 sps:$4 sm:$0xff]  }
  0x45   :  { %2477 = vmatprep.subr.bf16.mxu1 %v3462_v33  ;;  %v3551_v33 = vld [vmem:[#allocation5 + $0x930] ss:$24 sps:$4 sm:$0xff]   ;;  %v3571_v48 = vld [vmem:[#allocation5 + $0xba4] ss:$24 sps:$4 sm:$0xff]   ;;  %s3004_s2 = sshll.u32 %s4092_s0, 4  ;;  %s3005_s2 = int_to_ptr.vmem [resolvable:$true] %s3004_s2 }
  0x46   :  { %s4061_s28 = scalar_lea.vmem %s3005_s2, 768  ;;  %p4066_p2 = scmp.lt.s32.totalorder %s3005_s2, %s3005_s2 }
  0x47   :  { %2437 = vmatpush2.bf16.msra.mxu0 %v3464_v34  ;;  %v4134_v34 = vld [vmem:[#allocation2 + $0x10] sm:$0xff]  ;;  %p4062_p1 = scmp.ne.s32.totalorder %s3005_s2, %s4061_s28  ;;  %p4067_p3 = scmp.lt.s32.totalorder %s4061_s28, %s4061_s28 }
  0x48   :  { %2478 = vmatpush2.bf16.msra.mxu1 %v3465_v35  ;;  %2438 = vmatprep.subr.bf16.mxu0 %v3466_v36  ;;  %v4136_v35 = vld [vmem:[#allocation2 + $0x18] sm:$0xff] }
  0x49   :  { %2479 = vmatprep.subr.bf16.mxu1 %v3468_v37  ;;  %v3556_v36 = vld [vmem:[#allocation5 + $0x604] ss:$24 sps:$4 sm:$0xff]   ;;  %p4068_p4 = por %p4067_p3, %p4066_p2 }
  0x4a   :  { %v3559_v37 = vld [vmem:[#allocation5 + $0x904] ss:$24 sps:$4 sm:$0xff]  }
  0x4b   :  { %2439 = vmatpush2.bf16.msra.mxu0 %v3470_v38  ;;  %v4140_v38 = vcombine.high %v4134_v34, %v4134_v34  ;;  %p4069_p5 = pnand %p4068_p4, %p4062_p1 }
  0x4c   :  { %2480 = vmatpush2.bf16.msra.mxu1 %v3471_v39  ;;  %2440 = vmatprep.subr.bf16.mxu0 %v3472_v40  ;;  %v4144_v39 = vcombine.high %v4136_v35, %v4136_v35  ;;  %v3554_v40 = vld [vmem:[#allocation5 + $0x600] ss:$24 sps:$4 sm:$0xff]  }
  0x4d   :  { %2481 = vmatprep.subr.bf16.mxu1 %v3474_v41  ;;  %v3557_v41 = vld [vmem:[#allocation5 + $0x900] ss:$24 sps:$4 sm:$0xff]  }
  0x4f   :  { %2441 = vmatpush2.bf16.msra.mxu0 %v3476_v42  ;;  %v3562_v42 = vld [vmem:[#allocation5 + $0x8d4] ss:$24 sps:$4 sm:$0xff]  }
  0x50   :  { %2482 = vmatpush2.bf16.msra.mxu1 %v3477_v43  ;;  %2442 = vmatprep.subr.bf16.mxu0 %v3478_v44  ;;  %v3565_v43 = vld [vmem:[#allocation5 + $0xbd4] ss:$24 sps:$4 sm:$0xff]   ;;  %v3560_v44 = vld [vmem:[#allocation5 + $0x8d0] ss:$24 sps:$4 sm:$0xff]  }
  0x51   :  { %2483 = vmatprep.subr.bf16.mxu1 %v3480_v45  ;;  %v3563_v45 = vld [vmem:[#allocation5 + $0xbd0] ss:$24 sps:$4 sm:$0xff]  }
  0x53   :  { %2443 = vmatpush2.bf16.msra.mxu0 %v3482_v49  ;;  %v3566_v49 = vld [vmem:[#allocation5 + $0x8a0] ss:$24 sps:$4 sm:$0xff]  }
  0x54   :  { %2484 = vmatpush2.bf16.msra.mxu1 %v3483_v50  ;;  %2444 = vmatprep.subr.bf16.mxu0 %v3484_v52  ;;  %v3569_v50 = vld [vmem:[#allocation5 + $0xba0] ss:$24 sps:$4 sm:$0xff]   ;;  %v3574_v52 = vld [vmem:[#allocation5 + $0x874] ss:$24 sps:$4 sm:$0xff]  }
  0x55   :  { %2485 = vmatprep.subr.bf16.mxu1 %v3486_v53  ;;  %v3577_v53 = vld [vmem:[#allocation5 + $0xb74] ss:$24 sps:$4 sm:$0xff]  }
  0x57   :  { %2445 = vmatpush2.bf16.msra.mxu0 %v3488_v54  ;;  %v3572_v54 = vld [vmem:[#allocation5 + $0x870] ss:$24 sps:$4 sm:$0xff]  }
  0x58   :  { %2486 = vmatpush2.bf16.msra.mxu1 %v3489_v55  ;;  %2446 = vmatprep.subr.bf16.mxu0 %v3490_v56  ;;  %v3575_v55 = vld [vmem:[#allocation5 + $0xb70] ss:$24 sps:$4 sm:$0xff]   ;;  %v3580_v56 = vld [vmem:[#allocation5 + $0x844] ss:$24 sps:$4 sm:$0xff]  }
  0x59   :  { %2487 = vmatprep.subr.bf16.mxu1 %v3492_v57  ;;  %v3583_v57 = vld [vmem:[#allocation5 + $0xb44] ss:$24 sps:$4 sm:$0xff]  }
  0x5b   :  { %2447 = vmatpush2.bf16.msra.mxu0 %v3494_v58  ;;  %v3578_v58 = vld [vmem:[#allocation5 + $0x840] ss:$24 sps:$4 sm:$0xff]  }
  0x5c   :  { %2488 = vmatpush2.bf16.msra.mxu1 %v3495_v59  ;;  %2448 = vmatprep.subr.bf16.mxu0 %v3496_v60  ;;  %v3581_v59 = vld [vmem:[#allocation5 + $0xb40] ss:$24 sps:$4 sm:$0xff]   ;;  %v3586_v60 = vld [vmem:[#allocation5 + $0x814] ss:$24 sps:$4 sm:$0xff]  }
  0x5d   :  { %2489 = vmatprep.subr.bf16.mxu1 %v3498_v61  ;;  %v3589_v61 = vld [vmem:[#allocation5 + $0xb14] ss:$24 sps:$4 sm:$0xff]  }
  0x5f   :  { %2449 = vmatpush2.bf16.msra.mxu0 %v3500_v62  ;;  %v3584_v62 = vld [vmem:[#allocation5 + $0x810] ss:$24 sps:$4 sm:$0xff]  }
  0x60   :  { %2490 = vmatpush2.bf16.msra.mxu1 %v3501_v63  ;;  %2450 = vmatprep.subr.bf16.mxu0 %v3502_v0  ;;  %v3587_v63 = vld [vmem:[#allocation5 + $0xb10] ss:$24 sps:$4 sm:$0xff]   ;;  %v3592_v0 = vld [vmem:[#allocation5 + $0x7e4] ss:$24 sps:$4 sm:$0xff]  }
  0x61   :  { %2491 = vmatprep.subr.bf16.mxu1 %v3504_v1  ;;  %v3595_v1 = vld [vmem:[#allocation5 + $0xae4] ss:$24 sps:$4 sm:$0xff]  }
  0x63   :  { %2451 = vmatpush2.bf16.msra.mxu0 %v3506_v2  ;;  %v3590_v2 = vld [vmem:[#allocation5 + $0x7e0] ss:$24 sps:$4 sm:$0xff]  }
  0x64   :  { %2492 = vmatpush2.bf16.msra.mxu1 %v3507_v3  ;;  %2502 = vmatprep.subr.bf16.mxu0 %v3514_v4  ;;  %v3593_v3 = vld [vmem:[#allocation5 + $0xae0] ss:$24 sps:$4 sm:$0xff]   ;;  %v3598_v4 = vld [vmem:[#allocation5 + $0x7b4] ss:$24 sps:$4 sm:$0xff]  }
  0x65   :  { %2543 = vmatprep.subr.bf16.mxu1 %v3517_v5  ;;  %v3601_v5 = vld [vmem:[#allocation5 + $0xab4] ss:$24 sps:$4 sm:$0xff]  }
  0x66   :  { %2453 = vmatmul.mubr.bf16.vlgmr.msra.gmra.mxu0 %v4128_v6 }
  0x67   :  { %2494 = vmatmul.mubr.bf16.vlgmr.msra.gmra.mxu1 %v4130_v7  ;;  %2503 = vmatpush1.bf16.msra.mxu0 %v3512_v8  ;;  %v3596_v8 = vld [vmem:[#allocation5 + $0x7b0] ss:$24 sps:$4 sm:$0xff]  }
  0x68   :  { %2544 = vmatpush1.bf16.msra.mxu1 %v3515_v9  ;;  %2504 = vmatprep.subr.bf16.mxu0 %v3520_v10  ;;  %v3599_v9 = vld [vmem:[#allocation5 + $0xab0] ss:$24 sps:$4 sm:$0xff]   ;;  %v3604_v10 = vld [vmem:[#allocation5 + $0x784] ss:$24 sps:$4 sm:$0xff]  }
  0x69   :  { %2545 = vmatprep.subr.bf16.mxu1 %v3523_v11  ;;  %2534 = vmatprep.mubr.bf16.mxu0 %v4140_v38  ;;  %v3607_v11 = vld [vmem:[#allocation5 + $0xa84] ss:$24 sps:$4 sm:$0xff]  }
  0x6a   :  { %2575 = vmatprep.mubr.bf16.mxu1 %v4144_v39 }
  0x6b   :  { %2505 = vmatpush1.bf16.msra.mxu0 %v3518_v12  ;;  %v3602_v12 = vld [vmem:[#allocation5 + $0x780] ss:$24 sps:$4 sm:$0xff]  }
  0x6c   :  { %2546 = vmatpush1.bf16.msra.mxu1 %v3521_v13  ;;  %2506 = vmatprep.subr.bf16.mxu0 %v3526_v14  ;;  %v3605_v13 = vld [vmem:[#allocation5 + $0xa80] ss:$24 sps:$4 sm:$0xff]   ;;  %v4150_v14 = vcombine.low %v4134_v34, %v4134_v34 }
  0x6d   :  { %2547 = vmatprep.subr.bf16.mxu1 %v3529_v15  ;;  %v4154_v15 = vcombine.low %v4136_v35, %v4136_v35 }
  0x6f   :  { %2507 = vmatpush1.bf16.msra.mxu0 %v3524_v16 }
  0x70   :  { %2548 = vmatpush1.bf16.msra.mxu1 %v3527_v17  ;;  %2508 = vmatprep.subr.bf16.mxu0 %v3532_v18 }
  0x71   :  { %2549 = vmatprep.subr.bf16.mxu1 %v3535_v19 }
  0x73   :  { %2509 = vmatpush1.bf16.msra.mxu0 %v3530_v20 }
  0x74   :  { %2550 = vmatpush1.bf16.msra.mxu1 %v3533_v21  ;;  %2510 = vmatprep.subr.bf16.mxu0 %v3538_v22 }
  0x75   :  { %2551 = vmatprep.subr.bf16.mxu1 %v3541_v23 }
  0x77   :  { %2511 = vmatpush1.bf16.msra.mxu0 %v3536_v24  ;;  %v442_v24 = vlaneseq }
  0x78   :  { %2552 = vmatpush1.bf16.msra.mxu1 %v3539_v25  ;;  %2512 = vmatprep.subr.bf16.mxu0 %v3544_v26 }
  0x79   :  { %2553 = vmatprep.subr.bf16.mxu1 %v3547_v27  ;;  %v4160_v25 = vshrl.u32 %v442_v24, 7  ;;  %v440_v27 = vld [vmem:[#allocation7] sm:$0x3f] }
  0x7b   :  { %2513 = vmatpush1.bf16.msra.mxu0 %v3542_v28  ;;  %v444_v26 = vsub.s32 0, %v4160_v25  ;;  %v448_v28 = vsub.s32 1, %v4160_v25 }
  0x7c   :  { %2554 = vmatpush1.bf16.msra.mxu1 %v3545_v29  ;;  %2514 = vmatprep.subr.bf16.mxu0 %v3550_v30 }
  0x7d   :  { %2555 = vmatprep.subr.bf16.mxu1 %v3553_v31  ;;  %v445_v29 = vrot.slane %v440_v27, %v444_v26  ;;  %v449_v30 = vrot.slane %v440_v27, %v448_v28  ;;  %v3624_v26 = vld [vmem:[#allocation5 + $0xf8] ss:$24 sps:$4 sm:$0xff]   ;;  %v3632_v28 = vld [vmem:[#allocation5 + $0xcc] ss:$24 sps:$4 sm:$0xff]  }
  0x7e   :  { %v3627_v27 = vld [vmem:[#allocation5 + $0x3f8] ss:$24 sps:$4 sm:$0xff]  }
  0x7f   :  { %2515 = vmatpush1.bf16.msra.mxu0 %v3548_v32 }
  0x80   :  { %2556 = vmatpush1.bf16.msra.mxu1 %v3551_v33  ;;  %2516 = vmatprep.subr.bf16.mxu0 %v3556_v36  ;;  %v4164_v33 = vand.u32 127, %v442_v24  ;;  %v3629_v24 = vld [vmem:[#allocation5 + $0x3fc] ss:$24 sps:$4 sm:$0xff]  }
  0x81   :  { %2557 = vmatprep.subr.bf16.mxu1 %v3559_v37 }
  0x82   :  { %vm2920_vm0 = vcmp.lt.s32.totalorder %v4164_v33, 16  ;;  %vm2921_vm10 = vcmp.ge.s32.totalorder %v4164_v33, 16  ;;  %vm2922_vm11 = vcmp.lt.s32.totalorder %v4164_v33, 37 }
  0x83   :  { %2517 = vmatpush1.bf16.msra.mxu0 %v3554_v40  ;;  %vm2923_vm12 = vmand %vm2921_vm10, %vm2922_vm11 }
  0x84   :  { %2558 = vmatpush1.bf16.msra.mxu1 %v3557_v41  ;;  %2518 = vmatprep.subr.bf16.mxu0 %v3562_v42 }
  0x85   :  { %2559 = vmatprep.subr.bf16.mxu1 %v3565_v43 }
  0x87   :  { %2519 = vmatpush2.bf16.msra.mxu0 %v3560_v44 }
  0x88   :  { %2560 = vmatpush2.bf16.msra.mxu1 %v3563_v45  ;;  %2520 = vmatprep.subr.bf16.mxu0 %v3568_v46 }
  0x89   :  { %2561 = vmatprep.subr.bf16.mxu1 %v3571_v48 }
  0x8b   :  { %2521 = vmatpush2.bf16.msra.mxu0 %v3566_v49 }
  0x8c   :  { %2562 = vmatpush2.bf16.msra.mxu1 %v3569_v50  ;;  %2522 = vmatprep.subr.bf16.mxu0 %v3574_v52 }
  0x8d   :  { %2563 = vmatprep.subr.bf16.mxu1 %v3577_v53 }
  0x8f   :  { %2523 = vmatpush2.bf16.msra.mxu0 %v3572_v54 }
  0x90   :  { %2564 = vmatpush2.bf16.msra.mxu1 %v3575_v55  ;;  %2524 = vmatprep.subr.bf16.mxu0 %v3580_v56 }
  0x91   :  { %2565 = vmatprep.subr.bf16.mxu1 %v3583_v57 }
  0x93   :  { %2525 = vmatpush2.bf16.msra.mxu0 %v3578_v58 }
  0x94   :  { %2566 = vmatpush2.bf16.msra.mxu1 %v3581_v59  ;;  %2526 = vmatprep.subr.bf16.mxu0 %v3586_v60 }
  0x95   :  { %2567 = vmatprep.subr.bf16.mxu1 %v3589_v61 }
  0x97   :  { %2527 = vmatpush2.bf16.msra.mxu0 %v3584_v62 }
  0x98   :  { %2568 = vmatpush2.bf16.msra.mxu1 %v3587_v63  ;;  %2528 = vmatprep.subr.bf16.mxu0 %v3592_v0 }
  0x99   :  { %2569 = vmatprep.subr.bf16.mxu1 %v3595_v1 }
  0x9b   :  { %2529 = vmatpush2.bf16.msra.mxu0 %v3590_v2 }
  0x9c   :  { %2570 = vmatpush2.bf16.msra.mxu1 %v3593_v3  ;;  %2530 = vmatprep.subr.bf16.mxu0 %v3598_v4 }
  0x9d   :  { %2571 = vmatprep.subr.bf16.mxu1 %v3601_v5 }
  0x9f   :  { %2531 = vmatpush2.bf16.msra.mxu0 %v3596_v8 }
  0xa0   :  { %2572 = vmatpush2.bf16.msra.mxu1 %v3599_v9  ;;  %2532 = vmatprep.subr.bf16.mxu0 %v3604_v10 }
  0xa1   :  { %2573 = vmatprep.subr.bf16.mxu1 %v3607_v11 }
  0xa3   :  { %2533 = vmatpush2.bf16.msra.mxu0 %v3602_v12 }
  0xa4   :  { %2574 = vmatpush2.bf16.msra.mxu1 %v3605_v13  ;;  %v3612_v13 = vld [vmem:[#allocation5 + $0x158] ss:$24 sps:$4 sm:$0xff]  }
  0xa6   :  { %2535 = vmatmul.mubr.bf16.vlgmr.msra.gmra.mxu0 %v4150_v14 }
  0xa7   :  { %2576 = vmatmul.mubr.bf16.vlgmr.msra.gmra.mxu1 %v4154_v15  ;;  %2616 = vmatprep.mubr.bf16.mxu0 %v4122_v47 }
  0xa8   :  { %2657 = vmatprep.mubr.bf16.mxu1 %v4124_v51 }
 0x126   :  { %v2454_v16 = vpop.f32.mrf.mxu0 }
 0x127   :  { %v2495_v17 = vpop.f32.mrf.mxu1  ;;  %v2455_v31 = vadd.f32 %v2454_v16, %v445_v29  ;;  %v3614_v16 = vld [vmem:[#allocation5 + $0x15c] ss:$24 sps:$4 sm:$0xff]   ;;  %v3635_v29 = vld [vmem:[#allocation5 + $0x3cc] ss:$24 sps:$4 sm:$0xff]  }
 0x128   :  { %v2456_v18 = vpop.f32.mrf.mxu0  ;;  %2584 = vmatprep.subr.bf16.mxu0 %v3614_v16  ;;  %v3692_v16 = vld [vmem:[#allocation5 + $0x1ec] ss:$24 sps:$4 sm:$0xff]  }
 0x129   :  { %v2497_v19 = vpop.f32.mrf.mxu1  ;;  %v2457_v32 = vadd.f32 %v2456_v18, %v449_v30  ;;  %v2496_v34 = vadd.f32 %v2495_v17, %v2455_v31  ;;  %v3615_v17 = vld [vmem:[#allocation5 + $0x458] ss:$24 sps:$4 sm:$0xff]   ;;  %v3617_v18 = vld [vmem:[#allocation5 + $0x45c] ss:$24 sps:$4 sm:$0xff]   ;;  %2585 = vmatpush1.bf16.msra.mxu0 %v3612_v13  ;;  %v3630_v30 = vld [vmem:[#allocation5 + $0xc8] ss:$24 sps:$4 sm:$0xff]  }
 0x12a   :  { %v2458_v20 = vpop.f32.mrf.mxu0  ;;  %2625 = vmatprep.subr.bf16.mxu1 %v3617_v18  ;;  %v3633_v31 = vld [vmem:[#allocation5 + $0x3c8] ss:$24 sps:$4 sm:$0xff]   ;;  %v3687_v13 = vld [vmem:[#allocation5 + $0x518] ss:$24 sps:$4 sm:$0xff]  }
 0x12b   :  { %v2499_v21 = vpop.f32.mrf.mxu1  ;;  %v2498_v37 = vadd.f32 %v2497_v19, %v2457_v32  ;;  %v3620_v19 = vld [vmem:[#allocation5 + $0x12c] ss:$24 sps:$4 sm:$0xff]   ;;  %2626 = vmatpush1.bf16.msra.mxu1 %v3615_v17  ;;  %v3638_v32 = vld [vmem:[#allocation5 + $0x9c] ss:$24 sps:$4 sm:$0xff]   ;;  %v3690_v18 = vld [vmem:[#allocation5 + $0x1e8] ss:$24 sps:$4 sm:$0xff]  }
 0x12c   :  { %v2459_v22 = vpop.f32.mrf.mxu0  ;;  %v3623_v20 = vld [vmem:[#allocation5 + $0x42c] ss:$24 sps:$4 sm:$0xff]   ;;  %v3618_v21 = vld [vmem:[#allocation5 + $0x128] ss:$24 sps:$4 sm:$0xff]   ;;  %2586 = vmatprep.subr.bf16.mxu0 %v3620_v19 }
 0x12d   :  { %v2500_v23 = vpop.f32.mrf.mxu1  ;;  %v3621_v22 = vld [vmem:[#allocation5 + $0x428] ss:$24 sps:$4 sm:$0xff]   ;;  %2627 = vmatprep.subr.bf16.mxu1 %v3623_v20  ;;  %2587 = vmatpush1.bf16.msra.mxu0 %v3618_v21  ;;  %v3695_v17 = vld [vmem:[#allocation5 + $0x4ec] ss:$24 sps:$4 sm:$0xff]   ;;  %v3698_v20 = vld [vmem:[#allocation5 + $0x1bc] ss:$24 sps:$4 sm:$0xff]  }
 0x12e   :  { %v3626_v23 = vld [vmem:[#allocation5 + $0xfc] ss:$24 sps:$4 sm:$0xff]   ;;  %v3693_v19 = vld [vmem:[#allocation5 + $0x4e8] ss:$24 sps:$4 sm:$0xff]  }
 0x12f   :  { %2628 = vmatpush1.bf16.msra.mxu1 %v3621_v22  ;;  %2588 = vmatprep.subr.bf16.mxu0 %v3626_v23  ;;  %v3701_v21 = vld [vmem:[#allocation5 + $0x4bc] ss:$24 sps:$4 sm:$0xff]   ;;  %v3696_v22 = vld [vmem:[#allocation5 + $0x1b8] ss:$24 sps:$4 sm:$0xff]  }
 0x130   :  { %2629 = vmatprep.subr.bf16.mxu1 %v3629_v24  ;;  %v3699_v23 = vld [vmem:[#allocation5 + $0x4b8] ss:$24 sps:$4 sm:$0xff]   ;;  %v3704_v24 = vld [vmem:[#allocation5 + $0x18c] ss:$24 sps:$4 sm:$0xff]  }
 0x131   :  { %2589 = vmatpush1.bf16.msra.mxu0 %v3624_v26  ;;  %v3707_v26 = vld [vmem:[#allocation5 + $0x48c] ss:$24 sps:$4 sm:$0xff]  }
 0x132   :  { %2590 = vmatprep.subr.bf16.mxu0 %v3632_v28  ;;  %v3705_v28 = vld [vmem:[#allocation5 + $0x488] ss:$24 sps:$4 sm:$0xff]  }
 0x133   :  { %2630 = vmatpush1.bf16.msra.mxu1 %v3627_v27  ;;  %v3702_v27 = vld [vmem:[#allocation5 + $0x188] ss:$24 sps:$4 sm:$0xff]  }
 0x134   :  { %2631 = vmatprep.subr.bf16.mxu1 %v3635_v29  ;;  %v3710_v29 = vld [vmem:[#allocation5 + $0x75c] ss:$24 sps:$4 sm:$0xff]  }
 0x135   :  { %2591 = vmatpush1.bf16.msra.mxu0 %v3630_v30  ;;  %v3713_v30 = vld [vmem:[#allocation5 + $0xa5c] ss:$24 sps:$4 sm:$0xff]  }
 0x136   :  { %2592 = vmatprep.subr.bf16.mxu0 %v3638_v32  ;;  %v3711_v32 = vld [vmem:[#allocation5 + $0xa58] ss:$24 sps:$4 sm:$0xff]  }
 0x137   :  { %2632 = vmatpush1.bf16.msra.mxu1 %v3633_v31  ;;  %v3708_v31 = vld [vmem:[#allocation5 + $0x758] ss:$24 sps:$4 sm:$0xff]  }
 0x166   :  { %v2536_v35 = vpop.f32.mrf.mxu0 }
 0x167   :  { %v2577_v36 = vpop.f32.mrf.mxu1  ;;  %v2537_v40 = vadd.f32 %v2536_v35, %v2496_v34  ;;  %v3641_v34 = vld [vmem:[#allocation5 + $0x39c] ss:$24 sps:$4 sm:$0xff]   ;;  %v3636_v35 = vld [vmem:[#allocation5 + $0x98] ss:$24 sps:$4 sm:$0xff]  }
 0x168   :  { %v2538_v41 = vpop.f32.mrf.mxu0  ;;  %2633 = vmatprep.subr.bf16.mxu1 %v3641_v34  ;;  %2593 = vmatpush1.bf16.msra.mxu0 %v3636_v35  ;;  %v3716_v34 = vld [vmem:[#allocation5 + $0x72c] ss:$24 sps:$4 sm:$0xff]  }
 0x169   :  { %v2579_v42 = vpop.f32.mrf.mxu1  ;;  %v4167_v43 = vadd.f32 %v2577_v36, %v2537_v40  ;;  %v2539_v44 = vadd.f32 %v2538_v41, %v2498_v37  ;;  %v3639_v36 = vld [vmem:[#allocation5 + $0x398] ss:$24 sps:$4 sm:$0xff]   ;;  %v3644_v37 = vld [vmem:[#allocation5 + $0x6c] ss:$24 sps:$4 sm:$0xff]   ;;  %v3642_v41 = vld [vmem:[#allocation5 + $0x68] ss:$24 sps:$4 sm:$0xff]  }
 0x16a   :  { %v2540_v45 = vpop.f32.mrf.mxu0  ;;  %v3647_v40 = vld [vmem:[#allocation5 + $0x36c] ss:$24 sps:$4 sm:$0xff]   ;;  %2634 = vmatpush1.bf16.msra.mxu1 %v3639_v36  ;;  %2594 = vmatprep.subr.bf16.mxu0 %v3644_v37  ;;  %v3714_v36 = vld [vmem:[#allocation5 + $0x728] ss:$24 sps:$4 sm:$0xff]  }
 0x16b   :  { %v2581_v46 = vpop.f32.mrf.mxu1  ;;  %v2580_v48 = vadd.f32 %v2579_v42, %v2539_v44  ;;  %v2930_v49 = vsel %vm2920_vm0, %v4167_v43, -3e+38  ;;  %v3645_v42 = vld [vmem:[#allocation5 + $0x368] ss:$24 sps:$4 sm:$0xff]   ;;  %v3650_v44 = vld [vmem:[#allocation5 + $0x3c] ss:$24 sps:$4 sm:$0xff]   ;;  %2635 = vmatprep.subr.bf16.mxu1 %v3647_v40 }
 0x16c   :  { %v2541_v50 = vpop.f32.mrf.mxu0  ;;  %2931 = vmax.xlane.f32.xlu0 %v2930_v49  ;;  %v3653_v45 = vld [vmem:[#allocation5 + $0x33c] ss:$24 sps:$4 sm:$0xff]   ;;  %2595 = vmatpush1.bf16.msra.mxu0 %v3642_v41  ;;  %v3648_v46 = vld [vmem:[#allocation5 + $0x38] ss:$24 sps:$4 sm:$0xff]   ;;  %v3719_v35 = vld [vmem:[#allocation5 + $0xa2c] ss:$24 sps:$4 sm:$0xff]  }
 0x16d   :  { %v2582_v52 = vpop.f32.mrf.mxu1  ;;  %2913 = vst [vmem:[#allocation8 + $0x8] sm:$0xff] %v2580_v48  ;;  %2596 = vmatprep.subr.bf16.mxu0 %v3650_v44  ;;  %v3651_v48 = vld [vmem:[#allocation5 + $0x338] ss:$24 sps:$4 sm:$0xff]   ;;  %v3659_v50 = vld [vmem:[#allocation5 + $0x30c] ss:$24 sps:$4 sm:$0xff]  }
 0x16e   :  { %2636 = vmatpush1.bf16.msra.mxu1 %v3645_v42  ;;  %v3654_v52 = vld [vmem:[#allocation5 + $0x8] ss:$24 sps:$4 sm:$0xff]   ;;  %v3722_v40 = vld [vmem:[#allocation5 + $0x6fc] ss:$24 sps:$4 sm:$0xff]   ;;  %v3720_v42 = vld [vmem:[#allocation5 + $0x6f8] ss:$24 sps:$4 sm:$0xff]  }
 0x16f   :  { %2637 = vmatprep.subr.bf16.mxu1 %v3653_v45  ;;  %v3717_v37 = vld [vmem:[#allocation5 + $0xa28] ss:$24 sps:$4 sm:$0xff]   ;;  %v3725_v41 = vld [vmem:[#allocation5 + $0x9fc] ss:$24 sps:$4 sm:$0xff]   ;;  %v3723_v44 = vld [vmem:[#allocation5 + $0x9f8] ss:$24 sps:$4 sm:$0xff]  }
 0x170   :  { %2597 = vmatpush1.bf16.msra.mxu0 %v3648_v46  ;;  %v3728_v45 = vld [vmem:[#allocation5 + $0x6cc] ss:$24 sps:$4 sm:$0xff]  }
 0x171   :  { %v3731_v46 = vld [vmem:[#allocation5 + $0x9cc] ss:$24 sps:$4 sm:$0xff]  }
 0x172   :  { %2638 = vmatpush1.bf16.msra.mxu1 %v3651_v48  ;;  %v3726_v48 = vld [vmem:[#allocation5 + $0x6c8] ss:$24 sps:$4 sm:$0xff]  }
 0x173   :  { %2639 = vmatprep.subr.bf16.mxu1 %v3659_v50  ;;  %v3734_v50 = vld [vmem:[#allocation5 + $0x69c] ss:$24 sps:$4 sm:$0xff]  }
 0x1f5   :  { %v2932_v53 = vpop.xlane.xlu0 %2931 }
 0x1f6   :  { %vm2933_vm1 = vcmp.ge.f32.partialorder %v2930_v49, %v2932_v53  ;;  %v3657_v53 = vld [vmem:[#allocation5 + $0x308] ss:$24 sps:$4 sm:$0xff]  }
 0x1f7   :  { %v2934_v54 = vsel %vm2933_vm1, %v4164_v33, 128  ;;  %2640 = vmatpush1.bf16.msra.mxu1 %v3657_v53  ;;  %v3732_v53 = vld [vmem:[#allocation5 + $0x698] ss:$24 sps:$4 sm:$0xff]  }
 0x1f8   :  { %v2936_v55 = vshra.s32 %v2934_v54, 16  ;;  %v2935_v57 = vand.u32 65535, %v2934_v54  ;;  %v3662_v54 = vld [vmem:[#allocation5 + $0x2dc] ss:$24 sps:$4 sm:$0xff]  }
 0x1fa   :  { %v2938_v56 = vcvt.s32.f32 %v2936_v55  ;;  %v2937_v59 = vcvt.s32.f32 %v2935_v57  ;;  %v3665_v55 = vld [vmem:[#allocation5 + $0x5dc] ss:$24 sps:$4 sm:$0xff]   ;;  %v3663_v57 = vld [vmem:[#allocation5 + $0x5d8] ss:$24 sps:$4 sm:$0xff]  }
 0x1fb   :  { %2641 = vmatprep.subr.bf16.mxu1 %v3665_v55  ;;  %v3740_v55 = vld [vmem:[#allocation5 + $0x66c] ss:$24 sps:$4 sm:$0xff]  }
 0x1fc   :  { %2939 = vmin.xlane.f32.xlu0 %v2938_v56  ;;  %2642 = vmatpush2.bf16.msra.mxu1 %v3663_v57 }
 0x285   :  { %v2940_v58 = vpop.xlane.xlu0 %2939 }
 0x286   :  { %vm2941_vm2 = vcmp.eq.f32.partialorder %v2938_v56, %v2940_v58  ;;  %v2946_v61 = vcvt.f32.s32 %v2940_v58  ;;  %v3660_v56 = vld [vmem:[#allocation5 + $0x2d8] ss:$24 sps:$4 sm:$0xff]   ;;  %v3668_v58 = vld [vmem:[#allocation5 + $0x2ac] ss:$24 sps:$4 sm:$0xff]  }
 0x287   :  { %v2942_v60 = vsel %vm2941_vm2, %v2937_v59, inf  ;;  %v3671_v59 = vld [vmem:[#allocation5 + $0x5ac] ss:$24 sps:$4 sm:$0xff]  }
 0x288   :  { %2943 = vmin.xlane.f32.xlu1 %v2942_v60  ;;  %v2947_v63 = vshll.u32 %v2946_v61, 16  ;;  %v3666_v60 = vld [vmem:[#allocation5 + $0x2a8] ss:$24 sps:$4 sm:$0xff]   ;;  %2643 = vmatprep.subr.bf16.mxu1 %v3671_v59 }
 0x289   :  { %v3669_v61 = vld [vmem:[#allocation5 + $0x5a8] ss:$24 sps:$4 sm:$0xff]  }
 0x28a   :  { %2644 = vmatpush2.bf16.msra.mxu1 %v3669_v61 }
 0x311   :  { %v2944_v62 = vpop.xlane.xlu1 %2943 }
 0x312   :  { %v2945_v0 = vcvt.f32.s32 %v2944_v62  ;;  %v3674_v62 = vld [vmem:[#allocation5 + $0x27c] ss:$24 sps:$4 sm:$0xff]  }
 0x314   :  { %v2948_v1 = vadd.s32 %v2947_v63, %v2945_v0  ;;  %v3677_v63 = vld [vmem:[#allocation5 + $0x57c] ss:$24 sps:$4 sm:$0xff]   ;;  %v3672_v0 = vld [vmem:[#allocation5 + $0x278] ss:$24 sps:$4 sm:$0xff]  }
 0x315   :  { %2645 = vmatprep.subr.bf16.mxu1 %v3677_v63  ;;  %v3743_v63 = vld [vmem:[#allocation5 + $0x96c] ss:$24 sps:$4 sm:$0xff]  }
 0x316   :  { %vm2949_vm3 = vcmp.eq.s32.totalorder %v4164_v33, %v2948_v1  ;;  %v3675_v1 = vld [vmem:[#allocation5 + $0x578] ss:$24 sps:$4 sm:$0xff]  }
 0x317   :  { %v4174_v2 = vsel %vm2949_vm3, -3e+38, %v2930_v49  ;;  %v3656_v49 = vld [vmem:[#allocation5 + $0xc] ss:$24 sps:$4 sm:$0xff]   ;;  %2646 = vmatpush2.bf16.msra.mxu1 %v3675_v1  ;;  %v3746_v1 = vld [vmem:[#allocation5 + $0x63c] ss:$24 sps:$4 sm:$0xff]  }
 0x318   :  { %2951 = vmax.xlane.f32.xlu1 %v4174_v2  ;;  %2598 = vmatprep.subr.bf16.mxu0 %v3656_v49  ;;  %v3729_v49 = vld [vmem:[#allocation5 + $0x9c8] ss:$24 sps:$4 sm:$0xff]  }
 0x319   :  { %2599 = vmatpush1.bf16.msra.mxu0 %v3654_v52  ;;  %v3737_v52 = vld [vmem:[#allocation5 + $0x99c] ss:$24 sps:$4 sm:$0xff]  }
 0x31a   :  { %2600 = vmatprep.subr.bf16.mxu0 %v3662_v54  ;;  %v3735_v54 = vld [vmem:[#allocation5 + $0x998] ss:$24 sps:$4 sm:$0xff]  }
 0x31d   :  { %2601 = vmatpush2.bf16.msra.mxu0 %v3660_v56  ;;  %v3738_v56 = vld [vmem:[#allocation5 + $0x668] ss:$24 sps:$4 sm:$0xff]  }
 0x31e   :  { %2602 = vmatprep.subr.bf16.mxu0 %v3668_v58 }
 0x321   :  { %2603 = vmatpush2.bf16.msra.mxu0 %v3666_v60 }
 0x322   :  { %2604 = vmatprep.subr.bf16.mxu0 %v3674_v62 }
 0x325   :  { %2605 = vmatpush2.bf16.msra.mxu0 %v3672_v0  ;;  %v3741_v0 = vld [vmem:[#allocation5 + $0x968] ss:$24 sps:$4 sm:$0xff]  }
 0x3a1   :  { %v2952_v3 = vpop.xlane.xlu1 %2951 }
 0x3a2   :  { %vm2953_vm4 = vcmp.ge.f32.partialorder %v4174_v2, %v2952_v3  ;;  %v3680_v3 = vld [vmem:[#allocation5 + $0x24c] ss:$24 sps:$4 sm:$0xff]  }
 0x3a3   :  { %v2954_v4 = vsel %vm2953_vm4, %v4164_v33, 128  ;;  %2606 = vmatprep.subr.bf16.mxu0 %v3680_v3  ;;  %v3744_v3 = vld [vmem:[#allocation5 + $0x638] ss:$24 sps:$4 sm:$0xff]  }
 0x3a4   :  { %v2956_v5 = vshra.s32 %v2954_v4, 16  ;;  %v2955_v9 = vand.u32 65535, %v2954_v4  ;;  %v3683_v4 = vld [vmem:[#allocation5 + $0x54c] ss:$24 sps:$4 sm:$0xff]  }
 0x3a5   :  { %2647 = vmatprep.subr.bf16.mxu1 %v3683_v4  ;;  %v3747_v4 = vld [vmem:[#allocation5 + $0x938] ss:$24 sps:$4 sm:$0xff]  }
 0x3a6   :  { %v2958_v8 = vcvt.s32.f32 %v2956_v5  ;;  %v2957_v11 = vcvt.s32.f32 %v2955_v9  ;;  %v3678_v5 = vld [vmem:[#allocation5 + $0x248] ss:$24 sps:$4 sm:$0xff]   ;;  %v3686_v9 = vld [vmem:[#allocation5 + $0x21c] ss:$24 sps:$4 sm:$0xff]  }
 0x3a7   :  { %2607 = vmatpush2.bf16.msra.mxu0 %v3678_v5  ;;  %v3749_v5 = vld [vmem:[#allocation5 + $0x93c] ss:$24 sps:$4 sm:$0xff]  }
 0x3a8   :  { %2959 = vmin.xlane.f32.xlu0 %v2958_v8  ;;  %2608 = vmatprep.subr.bf16.mxu0 %v3686_v9  ;;  %v3753_v9 = vld [vmem:[#allocation5 + $0x908] ss:$24 sps:$4 sm:$0xff]  }
 0x431   :  { %v4179_v10 = vpop.xlane.xlu0 %2959 }
 0x432   :  { %vm2961_vm5 = vcmp.eq.f32.partialorder %v2958_v8, %v4179_v10  ;;  %v3681_v8 = vld [vmem:[#allocation5 + $0x548] ss:$24 sps:$4 sm:$0xff]   ;;  %v2966_v57 = vcvt.f32.s32 %v4179_v10  ;;  %v3752_v10 = vld [vmem:[#allocation5 + $0x60c] ss:$24 sps:$4 sm:$0xff]  }
 0x433   :  { %v2962_v12 = vsel %vm2961_vm5, %v2957_v11, inf  ;;  %v3689_v11 = vld [vmem:[#allocation5 + $0x51c] ss:$24 sps:$4 sm:$0xff]   ;;  %2648 = vmatpush2.bf16.msra.mxu1 %v3681_v8  ;;  %v3750_v8 = vld [vmem:[#allocation5 + $0x608] ss:$24 sps:$4 sm:$0xff]  }
 0x434   :  { %2963 = vmin.xlane.f32.xlu1 %v2962_v12  ;;  %v3684_v12 = vld [vmem:[#allocation5 + $0x218] ss:$24 sps:$4 sm:$0xff]   ;;  %2649 = vmatprep.subr.bf16.mxu1 %v3689_v11  ;;  %v2967_v59 = vshll.u32 %v2966_v57, 16  ;;  %v3755_v11 = vld [vmem:[#allocation5 + $0x90c] ss:$24 sps:$4 sm:$0xff]  }
 0x435   :  { %2609 = vmatpush2.bf16.msra.mxu0 %v3684_v12  ;;  %v3756_v12 = vld [vmem:[#allocation5 + $0x8d8] ss:$24 sps:$4 sm:$0xff]   ;;  %v3815_v57 = vld [vmem:[#allocation5 + $0x434] ss:$24 sps:$4 sm:$0xff]  }
 0x436   :  { %2610 = vmatprep.subr.bf16.mxu0 %v3692_v16  ;;  %v3764_v16 = vld [vmem:[#allocation5 + $0x8ac] ss:$24 sps:$4 sm:$0xff]  }
 0x437   :  { %2650 = vmatpush2.bf16.msra.mxu1 %v3687_v13  ;;  %v3761_v13 = vld [vmem:[#allocation5 + $0xbdc] ss:$24 sps:$4 sm:$0xff]  }
 0x438   :  { %2651 = vmatprep.subr.bf16.mxu1 %v3695_v17  ;;  %v3759_v17 = vld [vmem:[#allocation5 + $0xbd8] ss:$24 sps:$4 sm:$0xff]  }
 0x439   :  { %2611 = vmatpush2.bf16.msra.mxu0 %v3690_v18  ;;  %v3767_v18 = vld [vmem:[#allocation5 + $0xbac] ss:$24 sps:$4 sm:$0xff]  }
 0x43a   :  { %2612 = vmatprep.subr.bf16.mxu0 %v3698_v20  ;;  %v3770_v20 = vld [vmem:[#allocation5 + $0x87c] ss:$24 sps:$4 sm:$0xff]  }
 0x43b   :  { %2652 = vmatpush2.bf16.msra.mxu1 %v3693_v19  ;;  %v3762_v19 = vld [vmem:[#allocation5 + $0x8a8] ss:$24 sps:$4 sm:$0xff]  }
 0x43c   :  { %2653 = vmatprep.subr.bf16.mxu1 %v3701_v21  ;;  %v3765_v21 = vld [vmem:[#allocation5 + $0xba8] ss:$24 sps:$4 sm:$0xff]  }
 0x43d   :  { %2613 = vmatpush2.bf16.msra.mxu0 %v3696_v22  ;;  %v3773_v22 = vld [vmem:[#allocation5 + $0xb7c] ss:$24 sps:$4 sm:$0xff]  }
 0x43e   :  { %2614 = vmatprep.subr.bf16.mxu0 %v3704_v24  ;;  %v3776_v24 = vld [vmem:[#allocation5 + $0x84c] ss:$24 sps:$4 sm:$0xff]  }
 0x43f   :  { %2654 = vmatpush2.bf16.msra.mxu1 %v3699_v23  ;;  %v3768_v23 = vld [vmem:[#allocation5 + $0x878] ss:$24 sps:$4 sm:$0xff]  }
 0x440   :  { %2655 = vmatprep.subr.bf16.mxu1 %v3707_v26  ;;  %v3771_v26 = vld [vmem:[#allocation5 + $0xb78] ss:$24 sps:$4 sm:$0xff]  }
 0x441   :  { %2615 = vmatpush2.bf16.msra.mxu0 %v3702_v27  ;;  %v3779_v27 = vld [vmem:[#allocation5 + $0xb4c] ss:$24 sps:$4 sm:$0xff]  }
 0x442   :  { %2666 = vmatprep.subr.bf16.mxu0 %v3710_v29  ;;  %v3782_v29 = vld [vmem:[#allocation5 + $0x81c] ss:$24 sps:$4 sm:$0xff]  }
 0x443   :  { %2656 = vmatpush2.bf16.msra.mxu1 %v3705_v28  ;;  %v3774_v28 = vld [vmem:[#allocation5 + $0x848] ss:$24 sps:$4 sm:$0xff]  }
 0x444   :  { %2707 = vmatprep.subr.bf16.mxu1 %v3713_v30  ;;  %2617 = vmatmul.mubr.bf16.vlgmr.msra.gmra.mxu0 %v4128_v6  ;;  %v3777_v30 = vld [vmem:[#allocation5 + $0xb48] ss:$24 sps:$4 sm:$0xff]  }
 0x445   :  { %2667 = vmatpush1.bf16.msra.mxu0 %v3708_v31  ;;  %2698 = vmatprep.mubr.bf16.mxu0 %v4140_v38  ;;  %v3785_v31 = vld [vmem:[#allocation5 + $0xb1c] ss:$24 sps:$4 sm:$0xff]  }
 0x446   :  { %2658 = vmatmul.mubr.bf16.vlgmr.msra.gmra.mxu1 %v4130_v7  ;;  %2668 = vmatprep.subr.bf16.mxu0 %v3716_v34  ;;  %v3788_v34 = vld [vmem:[#allocation5 + $0x7ec] ss:$24 sps:$4 sm:$0xff]  }
 0x447   :  { %2708 = vmatpush1.bf16.msra.mxu1 %v3711_v32  ;;  %2739 = vmatprep.mubr.bf16.mxu1 %v4144_v39  ;;  %v3780_v32 = vld [vmem:[#allocation5 + $0x818] ss:$24 sps:$4 sm:$0xff]  }
 0x448   :  { %2709 = vmatprep.subr.bf16.mxu1 %v3719_v35  ;;  %v3783_v35 = vld [vmem:[#allocation5 + $0xb18] ss:$24 sps:$4 sm:$0xff]  }
 0x449   :  { %2669 = vmatpush1.bf16.msra.mxu0 %v3714_v36  ;;  %v3791_v36 = vld [vmem:[#allocation5 + $0xaec] ss:$24 sps:$4 sm:$0xff]  }
 0x44a   :  { %2670 = vmatprep.subr.bf16.mxu0 %v3722_v40  ;;  %v3794_v40 = vld [vmem:[#allocation5 + $0x7bc] ss:$24 sps:$4 sm:$0xff]  }
 0x44b   :  { %2710 = vmatpush1.bf16.msra.mxu1 %v3717_v37  ;;  %v3786_v37 = vld [vmem:[#allocation5 + $0x7e8] ss:$24 sps:$4 sm:$0xff]  }
 0x44c   :  { %2711 = vmatprep.subr.bf16.mxu1 %v3725_v41  ;;  %v3789_v41 = vld [vmem:[#allocation5 + $0xae8] ss:$24 sps:$4 sm:$0xff]  }
 0x44d   :  { %2671 = vmatpush1.bf16.msra.mxu0 %v3720_v42  ;;  %v3797_v42 = vld [vmem:[#allocation5 + $0xabc] ss:$24 sps:$4 sm:$0xff]  }
 0x44e   :  { %2672 = vmatprep.subr.bf16.mxu0 %v3728_v45  ;;  %v3800_v45 = vld [vmem:[#allocation5 + $0x78c] ss:$24 sps:$4 sm:$0xff]  }
 0x44f   :  { %2712 = vmatpush1.bf16.msra.mxu1 %v3723_v44  ;;  %v3792_v44 = vld [vmem:[#allocation5 + $0x7b8] ss:$24 sps:$4 sm:$0xff]  }
 0x450   :  { %2713 = vmatprep.subr.bf16.mxu1 %v3731_v46  ;;  %v3795_v46 = vld [vmem:[#allocation5 + $0xab8] ss:$24 sps:$4 sm:$0xff]  }
 0x451   :  { %2673 = vmatpush1.bf16.msra.mxu0 %v3726_v48  ;;  %v3803_v48 = vld [vmem:[#allocation5 + $0xa8c] ss:$24 sps:$4 sm:$0xff]  }
 0x452   :  { %2674 = vmatprep.subr.bf16.mxu0 %v3734_v50  ;;  %v3806_v50 = vld [vmem:[#allocation5 + $0x164] ss:$24 sps:$4 sm:$0xff]  }
 0x453   :  { %2714 = vmatpush1.bf16.msra.mxu1 %v3729_v49  ;;  %v3798_v49 = vld [vmem:[#allocation5 + $0x788] ss:$24 sps:$4 sm:$0xff]  }
 0x454   :  { %2715 = vmatprep.subr.bf16.mxu1 %v3737_v52  ;;  %v3801_v52 = vld [vmem:[#allocation5 + $0xa88] ss:$24 sps:$4 sm:$0xff]  }
 0x455   :  { %2675 = vmatpush1.bf16.msra.mxu0 %v3732_v53  ;;  %v3809_v53 = vld [vmem:[#allocation5 + $0x464] ss:$24 sps:$4 sm:$0xff]  }
 0x456   :  { %2676 = vmatprep.subr.bf16.mxu0 %v3740_v55  ;;  %v3812_v55 = vld [vmem:[#allocation5 + $0x134] ss:$24 sps:$4 sm:$0xff]  }
 0x457   :  { %2716 = vmatpush1.bf16.msra.mxu1 %v3735_v54  ;;  %v3804_v54 = vld [vmem:[#allocation5 + $0x160] ss:$24 sps:$4 sm:$0xff]  }
 0x458   :  { %2717 = vmatprep.subr.bf16.mxu1 %v3743_v63  ;;  %v3816_v63 = vld [vmem:[#allocation5 + $0x100] ss:$24 sps:$4 sm:$0xff]  }
 0x459   :  { %2677 = vmatpush1.bf16.msra.mxu0 %v3738_v56  ;;  %v3807_v56 = vld [vmem:[#allocation5 + $0x460] ss:$24 sps:$4 sm:$0xff]  }
 0x45a   :  { %2678 = vmatprep.subr.bf16.mxu0 %v3746_v1  ;;  %v3819_v1 = vld [vmem:[#allocation5 + $0x400] ss:$24 sps:$4 sm:$0xff]  }
 0x45b   :  { %2718 = vmatpush1.bf16.msra.mxu1 %v3741_v0  ;;  %v3824_v0 = vld [vmem:[#allocation5 + $0xd4] ss:$24 sps:$4 sm:$0xff]  }
 0x45c   :  { %2719 = vmatprep.subr.bf16.mxu1 %v3749_v5  ;;  %v3825_v5 = vld [vmem:[#allocation5 + $0x3d0] ss:$24 sps:$4 sm:$0xff]  }
 0x45d   :  { %2679 = vmatpush1.bf16.msra.mxu0 %v3744_v3  ;;  %v3827_v3 = vld [vmem:[#allocation5 + $0x3d4] ss:$24 sps:$4 sm:$0xff]  }
 0x45e   :  { %2680 = vmatprep.subr.bf16.mxu0 %v3752_v10  ;;  %v3833_v10 = vld [vmem:[#allocation5 + $0x3a4] ss:$24 sps:$4 sm:$0xff]  }
 0x45f   :  { %2720 = vmatpush1.bf16.msra.mxu1 %v3747_v4  ;;  %v3830_v4 = vld [vmem:[#allocation5 + $0xa4] ss:$24 sps:$4 sm:$0xff]  }
 0x460   :  { %2721 = vmatprep.subr.bf16.mxu1 %v3755_v11  ;;  %v3839_v11 = vld [vmem:[#allocation5 + $0x374] ss:$24 sps:$4 sm:$0xff]  }
 0x461   :  { %2681 = vmatpush1.bf16.msra.mxu0 %v3750_v8  ;;  %v3836_v8 = vld [vmem:[#allocation5 + $0x74] ss:$24 sps:$4 sm:$0xff]  }
 0x463   :  { %2722 = vmatpush1.bf16.msra.mxu1 %v3753_v9  ;;  %v3831_v9 = vld [vmem:[#allocation5 + $0x3a0] ss:$24 sps:$4 sm:$0xff]  }
 0x464   :  { %2723 = vmatprep.subr.bf16.mxu1 %v3761_v13  ;;  %v3837_v13 = vld [vmem:[#allocation5 + $0x370] ss:$24 sps:$4 sm:$0xff]  }
 0x467   :  { %2724 = vmatpush2.bf16.msra.mxu1 %v3759_v17  ;;  %v3840_v17 = vld [vmem:[#allocation5 + $0x40] ss:$24 sps:$4 sm:$0xff]  }
 0x468   :  { %2725 = vmatprep.subr.bf16.mxu1 %v3767_v18  ;;  %v3848_v18 = vld [vmem:[#allocation5 + $0x14] ss:$24 sps:$4 sm:$0xff]  }
 0x46b   :  { %2726 = vmatpush2.bf16.msra.mxu1 %v3765_v21  ;;  %v3846_v21 = vld [vmem:[#allocation5 + $0x10] ss:$24 sps:$4 sm:$0xff]  }
 0x46c   :  { %2727 = vmatprep.subr.bf16.mxu1 %v3773_v22  ;;  %v3854_v22 = vld [vmem:[#allocation5 + $0x2e4] ss:$24 sps:$4 sm:$0xff]  }
 0x46f   :  { %2728 = vmatpush2.bf16.msra.mxu1 %v3771_v26  ;;  %v3852_v26 = vld [vmem:[#allocation5 + $0x2e0] ss:$24 sps:$4 sm:$0xff]  }
 0x470   :  { %2729 = vmatprep.subr.bf16.mxu1 %v3779_v27  ;;  %v3860_v27 = vld [vmem:[#allocation5 + $0x2b4] ss:$24 sps:$4 sm:$0xff]  }
 0x473   :  { %2730 = vmatpush2.bf16.msra.mxu1 %v3777_v30  ;;  %v3858_v30 = vld [vmem:[#allocation5 + $0x2b0] ss:$24 sps:$4 sm:$0xff]  }
 0x474   :  { %2731 = vmatprep.subr.bf16.mxu1 %v3785_v31  ;;  %v3866_v31 = vld [vmem:[#allocation5 + $0x284] ss:$24 sps:$4 sm:$0xff]  }
 0x477   :  { %2732 = vmatpush2.bf16.msra.mxu1 %v3783_v35  ;;  %v3864_v35 = vld [vmem:[#allocation5 + $0x280] ss:$24 sps:$4 sm:$0xff]  }
 0x478   :  { %2733 = vmatprep.subr.bf16.mxu1 %v3791_v36  ;;  %v3872_v36 = vld [vmem:[#allocation5 + $0x254] ss:$24 sps:$4 sm:$0xff]  }
 0x47b   :  { %2734 = vmatpush2.bf16.msra.mxu1 %v3789_v41  ;;  %v3870_v41 = vld [vmem:[#allocation5 + $0x250] ss:$24 sps:$4 sm:$0xff]  }
 0x47c   :  { %2735 = vmatprep.subr.bf16.mxu1 %v3797_v42  ;;  %v3878_v42 = vld [vmem:[#allocation5 + $0x224] ss:$24 sps:$4 sm:$0xff]  }
 0x47f   :  { %2736 = vmatpush2.bf16.msra.mxu1 %v3795_v46  ;;  %v3876_v46 = vld [vmem:[#allocation5 + $0x220] ss:$24 sps:$4 sm:$0xff]  }
 0x480   :  { %2737 = vmatprep.subr.bf16.mxu1 %v3803_v48  ;;  %v3884_v48 = vld [vmem:[#allocation5 + $0x1f4] ss:$24 sps:$4 sm:$0xff]  }
 0x483   :  { %2738 = vmatpush2.bf16.msra.mxu1 %v3801_v52  ;;  %v3882_v52 = vld [vmem:[#allocation5 + $0x1f0] ss:$24 sps:$4 sm:$0xff]  }
 0x484   :  { %2789 = vmatprep.subr.bf16.mxu1 %v3809_v53  ;;  %v3890_v53 = vld [vmem:[#allocation5 + $0x1c4] ss:$24 sps:$4 sm:$0xff]  }
 0x486   :  { %2740 = vmatmul.mubr.bf16.vlgmr.msra.gmra.mxu1 %v4154_v15 }
 0x487   :  { %2790 = vmatpush1.bf16.msra.mxu1 %v3807_v56  ;;  %2821 = vmatprep.mubr.bf16.mxu1 %v4124_v51  ;;  %v3828_v51 = vld [vmem:[#allocation5 + $0xa0] ss:$24 sps:$4 sm:$0xff]  }
 0x488   :  { %2791 = vmatprep.subr.bf16.mxu1 %v3815_v57  ;;  %v3888_v56 = vld [vmem:[#allocation5 + $0x1c0] ss:$24 sps:$4 sm:$0xff]   ;;  %v3896_v57 = vld [vmem:[#allocation5 + $0x194] ss:$24 sps:$4 sm:$0xff]  }
 0x4bd   :  { %v2964_v58 = vpop.xlane.xlu1 %2963 }
 0x4be   :  { %v2965_v60 = vcvt.f32.s32 %v2964_v58  ;;  %v3810_v58 = vld [vmem:[#allocation5 + $0x130] ss:$24 sps:$4 sm:$0xff]  }
 0x4c0   :  { %v2968_v61 = vadd.s32 %v2967_v59, %v2965_v60  ;;  %v3818_v59 = vld [vmem:[#allocation5 + $0x104] ss:$24 sps:$4 sm:$0xff]   ;;  %v3813_v60 = vld [vmem:[#allocation5 + $0x430] ss:$24 sps:$4 sm:$0xff]  }
 0x4c1   :  { %2792 = vmatpush1.bf16.msra.mxu1 %v3813_v60  ;;  %v3894_v60 = vld [vmem:[#allocation5 + $0x190] ss:$24 sps:$4 sm:$0xff]  }
 0x4c2   :  { %vm2969_vm6 = vcmp.eq.s32.totalorder %v4164_v33, %v2968_v61  ;;  %v3821_v61 = vld [vmem:[#allocation5 + $0x404] ss:$24 sps:$4 sm:$0xff]  }
 0x4c3   :  { %v4189_v62 = vsel %vm2969_vm6, -3e+38, %v4174_v2  ;;  %v3758_v2 = vld [vmem:[#allocation5 + $0x8dc] ss:$24 sps:$4 sm:$0xff]   ;;  %2793 = vmatprep.subr.bf16.mxu1 %v3821_v61 }
 0x4c4   :  { %2971 = vmax.xlane.f32.xlu0 %v4189_v62  ;;  %2682 = vmatprep.subr.bf16.mxu0 %v3758_v2  ;;  %v3834_v2 = vld [vmem:[#allocation5 + $0x70] ss:$24 sps:$4 sm:$0xff]   ;;  %v3902_v61 = vld [vmem:[#allocation5 + $0x764] ss:$24 sps:$4 sm:$0xff]  }
 0x4c5   :  { %2683 = vmatpush2.bf16.msra.mxu0 %v3756_v12  ;;  %2794 = vmatpush1.bf16.msra.mxu1 %v3819_v1  ;;  %v3842_v12 = vld [vmem:[#allocation5 + $0x44] ss:$24 sps:$4 sm:$0xff]   ;;  %v3900_v1 = vld [vmem:[#allocation5 + $0x760] ss:$24 sps:$4 sm:$0xff]  }
 0x4c6   :  { %2684 = vmatprep.subr.bf16.mxu0 %v3764_v16  ;;  %2795 = vmatprep.subr.bf16.mxu1 %v3827_v3  ;;  %v3845_v16 = vld [vmem:[#allocation5 + $0x344] ss:$24 sps:$4 sm:$0xff]   ;;  %v3908_v3 = vld [vmem:[#allocation5 + $0x734] ss:$24 sps:$4 sm:$0xff]  }
 0x4c9   :  { %2685 = vmatpush2.bf16.msra.mxu0 %v3762_v19  ;;  %2796 = vmatpush1.bf16.msra.mxu1 %v3825_v5  ;;  %v3843_v19 = vld [vmem:[#allocation5 + $0x340] ss:$24 sps:$4 sm:$0xff]   ;;  %v3906_v5 = vld [vmem:[#allocation5 + $0x730] ss:$24 sps:$4 sm:$0xff]  }
 0x4ca   :  { %2686 = vmatprep.subr.bf16.mxu0 %v3770_v20  ;;  %2797 = vmatprep.subr.bf16.mxu1 %v3833_v10  ;;  %v3851_v20 = vld [vmem:[#allocation5 + $0x314] ss:$24 sps:$4 sm:$0xff]   ;;  %v3914_v10 = vld [vmem:[#allocation5 + $0x704] ss:$24 sps:$4 sm:$0xff]  }
 0x4cd   :  { %2687 = vmatpush2.bf16.msra.mxu0 %v3768_v23  ;;  %2798 = vmatpush1.bf16.msra.mxu1 %v3831_v9  ;;  %v3849_v23 = vld [vmem:[#allocation5 + $0x310] ss:$24 sps:$4 sm:$0xff]   ;;  %v3912_v9 = vld [vmem:[#allocation5 + $0x700] ss:$24 sps:$4 sm:$0xff]  }
 0x4ce   :  { %2688 = vmatprep.subr.bf16.mxu0 %v3776_v24  ;;  %2799 = vmatprep.subr.bf16.mxu1 %v3839_v11  ;;  %v3857_v24 = vld [vmem:[#allocation5 + $0x5e4] ss:$24 sps:$4 sm:$0xff]   ;;  %v3915_v11 = vld [vmem:[#allocation5 + $0xa00] ss:$24 sps:$4 sm:$0xff]  }
 0x4d1   :  { %2689 = vmatpush2.bf16.msra.mxu0 %v3774_v28  ;;  %2800 = vmatpush1.bf16.msra.mxu1 %v3837_v13  ;;  %v3855_v28 = vld [vmem:[#allocation5 + $0x5e0] ss:$24 sps:$4 sm:$0xff]   ;;  %v3929_v13 = vld [vmem:[#allocation5 + $0x9a4] ss:$24 sps:$4 sm:$0xff]  }
 0x4d2   :  { %2690 = vmatprep.subr.bf16.mxu0 %v3782_v29  ;;  %2801 = vmatprep.subr.bf16.mxu1 %v3845_v16  ;;  %v3863_v29 = vld [vmem:[#allocation5 + $0x5b4] ss:$24 sps:$4 sm:$0xff]  }
 0x4d3   :  { %v3932_v16 = vld [vmem:[#allocation5 + $0x674] ss:$24 sps:$4 sm:$0xff]  }
 0x4d5   :  { %2691 = vmatpush2.bf16.msra.mxu0 %v3780_v32  ;;  %2802 = vmatpush1.bf16.msra.mxu1 %v3843_v19  ;;  %v3861_v32 = vld [vmem:[#allocation5 + $0x5b0] ss:$24 sps:$4 sm:$0xff]  }
 0x4d6   :  { %2692 = vmatprep.subr.bf16.mxu0 %v3788_v34  ;;  %2803 = vmatprep.subr.bf16.mxu1 %v3851_v20  ;;  %v3869_v34 = vld [vmem:[#allocation5 + $0x584] ss:$24 sps:$4 sm:$0xff]   ;;  %v3930_v19 = vld [vmem:[#allocation5 + $0x670] ss:$24 sps:$4 sm:$0xff]  }
 0x4d7   :  { %v3938_v20 = vld [vmem:[#allocation5 + $0x644] ss:$24 sps:$4 sm:$0xff]  }
 0x4d9   :  { %2693 = vmatpush2.bf16.msra.mxu0 %v3786_v37  ;;  %2804 = vmatpush1.bf16.msra.mxu1 %v3849_v23  ;;  %v3867_v37 = vld [vmem:[#allocation5 + $0x580] ss:$24 sps:$4 sm:$0xff]   ;;  %v3941_v23 = vld [vmem:[#allocation5 + $0x944] ss:$24 sps:$4 sm:$0xff]  }
 0x4da   :  { %2694 = vmatprep.subr.bf16.mxu0 %v3794_v40  ;;  %2805 = vmatprep.subr.bf16.mxu1 %v3857_v24  ;;  %v3875_v40 = vld [vmem:[#allocation5 + $0x554] ss:$24 sps:$4 sm:$0xff]   ;;  %v3936_v24 = vld [vmem:[#allocation5 + $0x640] ss:$24 sps:$4 sm:$0xff]  }
 0x4dd   :  { %2695 = vmatpush2.bf16.msra.mxu0 %v3792_v44  ;;  %2806 = vmatpush2.bf16.msra.mxu1 %v3855_v28  ;;  %v3873_v44 = vld [vmem:[#allocation5 + $0x550] ss:$24 sps:$4 sm:$0xff]  }
 0x4de   :  { %2696 = vmatprep.subr.bf16.mxu0 %v3800_v45  ;;  %2807 = vmatprep.subr.bf16.mxu1 %v3863_v29  ;;  %v3881_v45 = vld [vmem:[#allocation5 + $0x524] ss:$24 sps:$4 sm:$0xff]   ;;  %v3939_v29 = vld [vmem:[#allocation5 + $0x940] ss:$24 sps:$4 sm:$0xff]  }
 0x4e1   :  { %2697 = vmatpush2.bf16.msra.mxu0 %v3798_v49  ;;  %2808 = vmatpush2.bf16.msra.mxu1 %v3861_v32  ;;  %v3879_v49 = vld [vmem:[#allocation5 + $0x520] ss:$24 sps:$4 sm:$0xff]   ;;  %v3942_v32 = vld [vmem:[#allocation5 + $0x610] ss:$24 sps:$4 sm:$0xff]  }
 0x4e2   :  { %2748 = vmatprep.subr.bf16.mxu0 %v3806_v50  ;;  %2809 = vmatprep.subr.bf16.mxu1 %v3869_v34  ;;  %v3887_v50 = vld [vmem:[#allocation5 + $0x4f4] ss:$24 sps:$4 sm:$0xff]   ;;  %v3950_v34 = vld [vmem:[#allocation5 + $0x8e4] ss:$24 sps:$4 sm:$0xff]  }
 0x4e4   :  { %2699 = vmatmul.mubr.bf16.vlgmr.msra.gmra.mxu0 %v4150_v14 }
 0x4e5   :  { %2749 = vmatpush1.bf16.msra.mxu0 %v3804_v54  ;;  %2780 = vmatprep.mubr.bf16.mxu0 %v4122_v47  ;;  %v3822_v47 = vld [vmem:[#allocation5 + $0xd0] ss:$24 sps:$4 sm:$0xff]  }
 0x4e6   :  { %2750 = vmatprep.subr.bf16.mxu0 %v3812_v55  ;;  %2810 = vmatpush2.bf16.msra.mxu1 %v3867_v37  ;;  %v3885_v54 = vld [vmem:[#allocation5 + $0x4f0] ss:$24 sps:$4 sm:$0xff]   ;;  %v3893_v55 = vld [vmem:[#allocation5 + $0x4c4] ss:$24 sps:$4 sm:$0xff]   ;;  %v3948_v37 = vld [vmem:[#allocation5 + $0x8e0] ss:$24 sps:$4 sm:$0xff]  }
 0x4e7   :  { %2811 = vmatprep.subr.bf16.mxu1 %v3875_v40  ;;  %v3956_v40 = vld [vmem:[#allocation5 + $0x8b4] ss:$24 sps:$4 sm:$0xff]  }
 0x4e9   :  { %2751 = vmatpush1.bf16.msra.mxu0 %v3810_v58  ;;  %v3891_v58 = vld [vmem:[#allocation5 + $0x4c0] ss:$24 sps:$4 sm:$0xff]  }
 0x4ea   :  { %2752 = vmatprep.subr.bf16.mxu0 %v3818_v59  ;;  %2812 = vmatpush2.bf16.msra.mxu1 %v3873_v44  ;;  %v3899_v59 = vld [vmem:[#allocation5 + $0x494] ss:$24 sps:$4 sm:$0xff]  }
 0x4eb   :  { %2813 = vmatprep.subr.bf16.mxu1 %v3881_v45  ;;  %v3959_v44 = vld [vmem:[#allocation5 + $0xbb4] ss:$24 sps:$4 sm:$0xff]   ;;  %v3957_v45 = vld [vmem:[#allocation5 + $0xbb0] ss:$24 sps:$4 sm:$0xff]  }
 0x4ed   :  { %2753 = vmatpush1.bf16.msra.mxu0 %v3816_v63  ;;  %v3897_v63 = vld [vmem:[#allocation5 + $0x490] ss:$24 sps:$4 sm:$0xff]  }
 0x4ee   :  { %2754 = vmatprep.subr.bf16.mxu0 %v3824_v0  ;;  %2814 = vmatpush2.bf16.msra.mxu1 %v3879_v49  ;;  %v3905_v0 = vld [vmem:[#allocation5 + $0xa64] ss:$24 sps:$4 sm:$0xff]   ;;  %v3963_v49 = vld [vmem:[#allocation5 + $0xb80] ss:$24 sps:$4 sm:$0xff]  }
 0x4ef   :  { %2815 = vmatprep.subr.bf16.mxu1 %v3887_v50  ;;  %v3965_v50 = vld [vmem:[#allocation5 + $0xb84] ss:$24 sps:$4 sm:$0xff]  }
 0x4f1   :  { %2755 = vmatpush1.bf16.msra.mxu0 %v3822_v47  ;;  %v3903_v47 = vld [vmem:[#allocation5 + $0xa60] ss:$24 sps:$4 sm:$0xff]  }
 0x4f2   :  { %2756 = vmatprep.subr.bf16.mxu0 %v3830_v4  ;;  %2816 = vmatpush2.bf16.msra.mxu1 %v3885_v54  ;;  %v3911_v4 = vld [vmem:[#allocation5 + $0xa34] ss:$24 sps:$4 sm:$0xff]  }
 0x4f3   :  { %2817 = vmatprep.subr.bf16.mxu1 %v3893_v55  ;;  %v3968_v54 = vld [vmem:[#allocation5 + $0x854] ss:$24 sps:$4 sm:$0xff]   ;;  %v3966_v55 = vld [vmem:[#allocation5 + $0x850] ss:$24 sps:$4 sm:$0xff]  }
 0x4f5   :  { %2757 = vmatpush1.bf16.msra.mxu0 %v3828_v51  ;;  %v3909_v51 = vld [vmem:[#allocation5 + $0xa30] ss:$24 sps:$4 sm:$0xff]  }
 0x4f6   :  { %2758 = vmatprep.subr.bf16.mxu0 %v3836_v8  ;;  %2818 = vmatpush2.bf16.msra.mxu1 %v3891_v58  ;;  %v3917_v8 = vld [vmem:[#allocation5 + $0xa04] ss:$24 sps:$4 sm:$0xff]  }
 0x4f7   :  { %2819 = vmatprep.subr.bf16.mxu1 %v3899_v59  ;;  %v3974_v59 = vld [vmem:[#allocation5 + $0x824] ss:$24 sps:$4 sm:$0xff]  }
 0x4f9   :  { %2759 = vmatpush1.bf16.msra.mxu0 %v3834_v2  ;;  %v3923_v2 = vld [vmem:[#allocation5 + $0x9d4] ss:$24 sps:$4 sm:$0xff]  }
 0x4fa   :  { %2760 = vmatprep.subr.bf16.mxu0 %v3842_v12  ;;  %2820 = vmatpush2.bf16.msra.mxu1 %v3897_v63  ;;  %v3921_v12 = vld [vmem:[#allocation5 + $0x9d0] ss:$24 sps:$4 sm:$0xff]  }
 0x4fb   :  { %2871 = vmatprep.subr.bf16.mxu1 %v3905_v0  ;;  %v3977_v0 = vld [vmem:[#allocation5 + $0xb24] ss:$24 sps:$4 sm:$0xff]  }
 0x4fd   :  { %2761 = vmatpush1.bf16.msra.mxu0 %v3840_v17  ;;  %2822 = vmatmul.mubr.bf16.vlgmr.msra.gmra.mxu1 %v4130_v7  ;;  %v3926_v7 = vld [vmem:[#allocation5 + $0x6a4] ss:$24 sps:$4 sm:$0xff]   ;;  %v3927_v17 = vld [vmem:[#allocation5 + $0x9a0] ss:$24 sps:$4 sm:$0xff]  }
 0x4fe   :  { %2762 = vmatprep.subr.bf16.mxu0 %v3848_v18  ;;  %2872 = vmatpush1.bf16.msra.mxu1 %v3903_v47  ;;  %v3935_v18 = vld [vmem:[#allocation5 + $0x974] ss:$24 sps:$4 sm:$0xff]  }
 0x4ff   :  { %2903 = vmatprep.mubr.bf16.mxu1 %v4144_v39  ;;  %2873 = vmatprep.subr.bf16.mxu1 %v3911_v4  ;;  %v3924_v39 = vld [vmem:[#allocation5 + $0x6a0] ss:$24 sps:$4 sm:$0xff]   ;;  %v3980_v4 = vld [vmem:[#allocation5 + $0x7f4] ss:$24 sps:$4 sm:$0xff]  }
 0x501   :  { %2763 = vmatpush1.bf16.msra.mxu0 %v3846_v21  ;;  %v3933_v21 = vld [vmem:[#allocation5 + $0x970] ss:$24 sps:$4 sm:$0xff]  }
 0x502   :  { %2764 = vmatprep.subr.bf16.mxu0 %v3854_v22  ;;  %2874 = vmatpush1.bf16.msra.mxu1 %v3909_v51  ;;  %v3975_v51 = vld [vmem:[#allocation5 + $0xb20] ss:$24 sps:$4 sm:$0xff]  }
 0x503   :  { %2875 = vmatprep.subr.bf16.mxu1 %v3917_v8  ;;  %v3983_v8 = vld [vmem:[#allocation5 + $0xaf4] ss:$24 sps:$4 sm:$0xff]  }
 0x505   :  { %2765 = vmatpush2.bf16.msra.mxu0 %v3852_v26 }
 0x506   :  { %2766 = vmatprep.subr.bf16.mxu0 %v3860_v27  ;;  %2876 = vmatpush1.bf16.msra.mxu1 %v3915_v11  ;;  %v3944_v27 = vld [vmem:[#allocation5 + $0x614] ss:$24 sps:$4 sm:$0xff]  }
 0x507   :  { %2877 = vmatprep.subr.bf16.mxu1 %v3923_v2  ;;  %v3978_v2 = vld [vmem:[#allocation5 + $0x7f0] ss:$24 sps:$4 sm:$0xff]  }
 0x509   :  { %2767 = vmatpush2.bf16.msra.mxu0 %v3858_v30  ;;  %v3947_v30 = vld [vmem:[#allocation5 + $0x914] ss:$24 sps:$4 sm:$0xff]  }
 0x50a   :  { %2768 = vmatprep.subr.bf16.mxu0 %v3866_v31  ;;  %2878 = vmatpush1.bf16.msra.mxu1 %v3921_v12 }
 0x50b   :  { %2879 = vmatprep.subr.bf16.mxu1 %v3929_v13  ;;  %v3981_v13 = vld [vmem:[#allocation5 + $0xaf0] ss:$24 sps:$4 sm:$0xff]  }
 0x50d   :  { %2769 = vmatpush2.bf16.msra.mxu0 %v3864_v35  ;;  %v3945_v35 = vld [vmem:[#allocation5 + $0x910] ss:$24 sps:$4 sm:$0xff]  }
 0x50e   :  { %2770 = vmatprep.subr.bf16.mxu0 %v3872_v36  ;;  %2880 = vmatpush1.bf16.msra.mxu1 %v3927_v17  ;;  %v3953_v36 = vld [vmem:[#allocation5 + $0xbe4] ss:$24 sps:$4 sm:$0xff]  }
 0x50f   :  { %2881 = vmatprep.subr.bf16.mxu1 %v3935_v18  ;;  %v3984_v18 = vld [vmem:[#allocation5 + $0x7c0] ss:$24 sps:$4 sm:$0xff]  }
 0x511   :  { %2771 = vmatpush2.bf16.msra.mxu0 %v3870_v41  ;;  %v3951_v41 = vld [vmem:[#allocation5 + $0xbe0] ss:$24 sps:$4 sm:$0xff]  }
 0x512   :  { %2772 = vmatprep.subr.bf16.mxu0 %v3878_v42  ;;  %2882 = vmatpush1.bf16.msra.mxu1 %v3933_v21  ;;  %v3954_v42 = vld [vmem:[#allocation5 + $0x8b0] ss:$24 sps:$4 sm:$0xff]   ;;  %v3995_v21 = vld [vmem:[#allocation5 + $0xa94] ss:$24 sps:$4 sm:$0xff]  }
 0x513   :  { %2883 = vmatprep.subr.bf16.mxu1 %v3941_v23  ;;  %v3993_v23 = vld [vmem:[#allocation5 + $0xa90] ss:$24 sps:$4 sm:$0xff]  }
 0x515   :  { %2773 = vmatpush2.bf16.msra.mxu0 %v3876_v46  ;;  %v3962_v46 = vld [vmem:[#allocation5 + $0x884] ss:$24 sps:$4 sm:$0xff]  }
 0x516   :  { %2774 = vmatprep.subr.bf16.mxu0 %v3884_v48  ;;  %2884 = vmatpush1.bf16.msra.mxu1 %v3939_v29  ;;  %v3960_v48 = vld [vmem:[#allocation5 + $0x880] ss:$24 sps:$4 sm:$0xff]  }
 0x517   :  { %2885 = vmatprep.subr.bf16.mxu1 %v3947_v30 }
 0x519   :  { %2775 = vmatpush2.bf16.msra.mxu0 %v3882_v52  ;;  %v2618_v52 = vpop.f32.mrf.mxu0 }
 0x51a   :  { %2776 = vmatprep.subr.bf16.mxu0 %v3890_v53  ;;  %2886 = vmatpush1.bf16.msra.mxu1 %v3945_v35  ;;  %v2659_v53 = vpop.f32.mrf.mxu1 }
 0x51b   :  { %2887 = vmatprep.subr.bf16.mxu1 %v3953_v36 }
 0x51c   :  { %v2661_v58 = vpop.f32.mrf.mxu1 }
 0x51d   :  { %2777 = vmatpush2.bf16.msra.mxu0 %v3888_v56  ;;  %v3971_v56 = vld [vmem:[#allocation5 + $0xb54] ss:$24 sps:$4 sm:$0xff]  }
 0x51e   :  { %2778 = vmatprep.subr.bf16.mxu0 %v3896_v57  ;;  %2888 = vmatpush2.bf16.msra.mxu1 %v3951_v41  ;;  %v2620_v57 = vpop.f32.mrf.mxu0  ;;  %v2663_v63 = vpop.f32.mrf.mxu1 }
 0x51f   :  { %2889 = vmatprep.subr.bf16.mxu1 %v3959_v44 }
 0x520   :  { %v2664_v47 = vpop.f32.mrf.mxu1 }
 0x521   :  { %2779 = vmatpush2.bf16.msra.mxu0 %v3894_v60  ;;  %v3969_v60 = vld [vmem:[#allocation5 + $0xb50] ss:$24 sps:$4 sm:$0xff]  }
 0x522   :  { %2830 = vmatprep.subr.bf16.mxu0 %v3902_v61  ;;  %2890 = vmatpush2.bf16.msra.mxu1 %v3957_v45  ;;  %v2622_v61 = vpop.f32.mrf.mxu0 }
 0x523   :  { %2891 = vmatprep.subr.bf16.mxu1 %v3965_v50 }
 0x524   :  { %2781 = vmatmul.mubr.bf16.vlgmr.msra.gmra.mxu0 %v4128_v6  ;;  %v3920_v6 = vld [vmem:[#allocation5 + $0x6d4] ss:$24 sps:$4 sm:$0xff]  }
 0x525   :  { %2831 = vmatpush1.bf16.msra.mxu0 %v3900_v1  ;;  %2862 = vmatprep.mubr.bf16.mxu0 %v4140_v38  ;;  %v3918_v38 = vld [vmem:[#allocation5 + $0x6d0] ss:$24 sps:$4 sm:$0xff]   ;;  %v3972_v1 = vld [vmem:[#allocation5 + $0x820] ss:$24 sps:$4 sm:$0xff]  }
 0x526   :  { %2832 = vmatprep.subr.bf16.mxu0 %v3908_v3  ;;  %2892 = vmatpush2.bf16.msra.mxu1 %v3963_v49  ;;  %v2623_v3 = vpop.f32.mrf.mxu0 }
 0x527   :  { %2893 = vmatprep.subr.bf16.mxu1 %v3971_v56  ;;  %v464_v56 = vsub.s32 5, %v4160_v25 }
 0x529   :  { %2833 = vmatpush1.bf16.msra.mxu0 %v3906_v5  ;;  %v452_v5 = vsub.s32 2, %v4160_v25 }
 0x52a   :  { %2834 = vmatprep.subr.bf16.mxu0 %v3914_v10  ;;  %v456_v10 = vsub.s32 3, %v4160_v25  ;;  %2894 = vmatpush2.bf16.msra.mxu1 %v3969_v60 }
 0x52b   :  { %2895 = vmatprep.subr.bf16.mxu1 %v3977_v0 }
 0x52d   :  { %2835 = vmatpush1.bf16.msra.mxu0 %v3912_v9  ;;  %v4210_v9 = vld [vmem:[#allocation7] sm:$0x3f] }
 0x52e   :  { %2836 = vmatprep.subr.bf16.mxu0 %v3920_v6  ;;  %v453_v6 = vrot.slane %v4210_v9, %v452_v5  ;;  %v457_v11 = vrot.slane %v4210_v9, %v456_v10  ;;  %2896 = vmatpush2.bf16.msra.mxu1 %v3975_v51 }
 0x52f   :  { %2897 = vmatprep.subr.bf16.mxu1 %v3983_v8 }
 0x530   :  { %v2621_v12 = vadd.f32 %v2620_v57, %v457_v11  ;;  %v465_v57 = vrot.slane %v4210_v9, %v464_v56 }
 0x531   :  { %2837 = vmatpush1.bf16.msra.mxu0 %v3918_v38  ;;  %v3986_v38 = vld [vmem:[#allocation5 + $0x7c4] ss:$24 sps:$4 sm:$0xff]  }
 0x532   :  { %2838 = vmatprep.subr.bf16.mxu0 %v3926_v7  ;;  %v2619_v7 = vadd.f32 %v2618_v52, %v453_v6  ;;  %v2662_v17 = vadd.f32 %v2661_v58, %v2621_v12  ;;  %2898 = vmatpush2.bf16.msra.mxu1 %v3981_v13  ;;  %v2924_v12 = vsub.f32 0.0, %v4167_v43 }
 0x534   :  { %v2925_v13 = vmul.f32 0.4, %v2924_v12 }
 0x535   :  { %2839 = vmatpush1.bf16.msra.mxu0 %v3924_v39  ;;  %v3989_v39 = vld [vmem:[#allocation5 + $0xac4] ss:$24 sps:$4 sm:$0xff]  }
 0x536   :  { %2840 = vmatprep.subr.bf16.mxu0 %v3932_v16  ;;  %v2660_v16 = vadd.f32 %v2659_v53, %v2619_v7  ;;  %2899 = vmatprep.subr.bf16.mxu1 %v3989_v39  ;;  %v2926_v39 = vmul.f32 1.442695, %v2925_v13 }
 0x538   :  { %3996 = vpow2.f32 %v2926_v39 }
 0x539   :  { %2841 = vmatpush1.bf16.msra.mxu0 %v3930_v19  ;;  %v3992_v19 = vld [vmem:[#allocation5 + $0x794] ss:$24 sps:$4 sm:$0xff]  }
 0x53a   :  { %2842 = vmatprep.subr.bf16.mxu0 %v3938_v20  ;;  %v3987_v20 = vld [vmem:[#allocation5 + $0xac0] ss:$24 sps:$4 sm:$0xff]  }
 0x53b   :  { %2900 = vmatpush2.bf16.msra.mxu1 %v3987_v20 }
 0x53c   :  { %2901 = vmatprep.subr.bf16.mxu1 %v3995_v21 }
 0x53d   :  { %2843 = vmatpush1.bf16.msra.mxu0 %v3936_v24 }
 0x53e   :  { %2844 = vmatprep.subr.bf16.mxu0 %v3944_v27 }
 0x53f   :  { %2902 = vmatpush2.bf16.msra.mxu1 %v3993_v23 }
 0x541   :  { %2845 = vmatpush1.bf16.msra.mxu0 %v3942_v32 }
 0x542   :  { %2846 = vmatprep.subr.bf16.mxu0 %v3950_v34  ;;  %2904 = vmatmul.mubr.bf16.vlgmr.msra.gmra.mxu1 %v4154_v15 }
 0x545   :  { %2847 = vmatpush2.bf16.msra.mxu0 %v3948_v37 }
 0x546   :  { %2848 = vmatprep.subr.bf16.mxu0 %v3956_v40  ;;  %v2741_v29 = vpop.f32.mrf.mxu1 }
 0x548   :  { %v2743_v34 = vpop.f32.mrf.mxu1 }
 0x549   :  { %2849 = vmatpush2.bf16.msra.mxu0 %v3954_v42 }
 0x54a   :  { %2850 = vmatprep.subr.bf16.mxu0 %v3962_v46  ;;  %v2745_v40 = vpop.f32.mrf.mxu1 }
 0x54c   :  { %v2746_v41 = vpop.f32.mrf.mxu1 }
 0x54d   :  { %v2972_v22 = vpop.xlane.xlu0 %2971  ;;  %2851 = vmatpush2.bf16.msra.mxu0 %v3960_v48 }
 0x54e   :  { %vm2973_vm7 = vcmp.ge.f32.partialorder %v4189_v62, %v2972_v22  ;;  %2852 = vmatprep.subr.bf16.mxu0 %v3968_v54  ;;  %v3990_v22 = vld [vmem:[#allocation5 + $0x790] ss:$24 sps:$4 sm:$0xff]  }
 0x54f   :  { %v4202_v26 = vsel %vm2973_vm7, %v4164_v33, 128 }
 0x550   :  { %v2976_v28 = vshra.s32 %v4202_v26, 16  ;;  %v2975_v42 = vand.u32 65535, %v4202_v26 }
 0x551   :  { %2853 = vmatpush2.bf16.msra.mxu0 %v3966_v55  ;;  %v460_v55 = vsub.s32 4, %v4160_v25 }
 0x552   :  { %v4205_v31 = vcvt.s32.f32 %v2976_v28  ;;  %2854 = vmatprep.subr.bf16.mxu0 %v3974_v59 }
 0x553   :  { %v461_v26 = vrot.slane %v4210_v9, %v460_v55 }
 0x554   :  { %2979 = vmin.xlane.f32.xlu1 %v4205_v31 }
 0x555   :  { %2855 = vmatpush2.bf16.msra.mxu0 %v3972_v1 }
 0x556   :  { %2856 = vmatprep.subr.bf16.mxu0 %v3980_v4 }
 0x559   :  { %2857 = vmatpush2.bf16.msra.mxu0 %v3978_v2 }
 0x55a   :  { %2858 = vmatprep.subr.bf16.mxu0 %v3986_v38 }
 0x55d   :  { %2859 = vmatpush2.bf16.msra.mxu0 %v3984_v18 }
 0x55e   :  { %2860 = vmatprep.subr.bf16.mxu0 %v3992_v19 }
 0x561   :  { %2861 = vmatpush2.bf16.msra.mxu0 %v3990_v22 }
 0x564   :  { %2863 = vmatmul.mubr.bf16.vlgmr.msra.gmra.mxu0 %v4150_v14  ;;  %v2977_v14 = vcvt.s32.f32 %v2975_v42 }
 0x5a4   :  { %v2700_v24 = vpop.f32.mrf.mxu0 }
 0x5a5   :  { %v2701_v27 = vadd.f32 %v2700_v24, %v2660_v16  ;;  %v3997_v16 = vpop.eup %3996 }
 0x5a6   :  { %v2702_v28 = vpop.f32.mrf.mxu0 }
 0x5a7   :  { %v2703_v30 = vadd.f32 %v2702_v28, %v2662_v17  ;;  %v2742_v32 = vadd.f32 %v2741_v29, %v2701_v27  ;;  %v2928_v17 = vadd.f32 1.0, %v3997_v16 }
 0x5a8   :  { %v2704_v35 = vpop.f32.mrf.mxu0 }
 0x5a9   :  { %2914 = vst [vmem:[#allocation8 + $0x10] sm:$0xff] %v2742_v32  ;;  %v2744_v36 = vadd.f32 %v2743_v34, %v2703_v30  ;;  %3998 = vrcp.f32 %v2928_v17 }
 0x5aa   :  { %v2705_v37 = vpop.f32.mrf.mxu0 }
 0x5ab   :  { %2915 = vst [vmem:[#allocation8 + $0x18] sm:$0xff] %v2744_v36 }
 0x5b6   :  { %v3999_v18 = vpop.eup %3998 }
 0x5bd   :  { %v2823_v48 = vpop.f32.mrf.mxu1 }
 0x5bf   :  { %v2825_v50 = vpop.f32.mrf.mxu1 }
 0x5c1   :  { %v2827_v53 = vpop.f32.mrf.mxu1 }
 0x5c3   :  { %v2828_v54 = vpop.f32.mrf.mxu1 }
 0x5dd   :  { %v2980_v44 = vpop.xlane.xlu1 %2979 }
 0x5de   :  { %vm2981_vm8 = vcmp.eq.f32.partialorder %v4205_v31, %v2980_v44  ;;  %v2986_v6 = vcvt.f32.s32 %v2980_v44 }
 0x5df   :  { %v2982_v15 = vsel %vm2981_vm8, %v2977_v14, inf }
 0x5e0   :  { %2983 = vmin.xlane.f32.xlu0 %v2982_v15  ;;  %v2987_v11 = vshll.u32 %v2986_v6, 16 }
 0x5e4   :  { %v2782_v45 = vpop.f32.mrf.mxu0 }
 0x5e5   :  { %v2783_v58 = vadd.f32 %v2782_v45, %v461_v26 }
 0x5e6   :  { %v2784_v46 = vpop.f32.mrf.mxu0 }
 0x5e7   :  { %v2785_v31 = vadd.f32 %v2784_v46, %v465_v57  ;;  %v2824_v59 = vadd.f32 %v2823_v48, %v2783_v58 }
 0x5e8   :  { %v2786_v49 = vpop.f32.mrf.mxu0 }
 0x5e9   :  { %v2826_v60 = vadd.f32 %v2825_v50, %v2785_v31 }
 0x5ea   :  { %v2787_v52 = vpop.f32.mrf.mxu0 }
 0x602   :  { %v2905_v1 = vpop.f32.mrf.mxu1 }
 0x604   :  { %v2907_v4 = vpop.f32.mrf.mxu1 }
 0x606   :  { %v2909_v25 = vpop.f32.mrf.mxu1 }
 0x608   :  { %v2910_v8 = vpop.f32.mrf.mxu1 }
 0x624   :  { %v2864_v61 = vpop.f32.mrf.mxu0 }
 0x625   :  { %v2865_v63 = vadd.f32 %v2864_v61, %v2824_v59 }
 0x626   :  { %v2866_v0 = vpop.f32.mrf.mxu0 }
 0x627   :  { %v2867_v3 = vadd.f32 %v2866_v0, %v2826_v60  ;;  %v2906_v47 = vadd.f32 %v2905_v1, %v2865_v63 }
 0x628   :  { %v2868_v5 = vpop.f32.mrf.mxu0 }
 0x629   :  { %2916 = vst [vmem:[#allocation8 + $0x20] sm:$0xff] %v2906_v47  ;;  %v2908_v10 = vadd.f32 %v2907_v4, %v2867_v3 }
 0x62a   :  { %v2869_v51 = vpop.f32.mrf.mxu0 }
 0x62b   :  { %2917 = vst [vmem:[#allocation8 + $0x28] sm:$0xff] %v2908_v10 }
 0x669   :  { %v2984_v9 = vpop.xlane.xlu0 %2983 }
 0x66a   :  { %v2985_v2 = vcvt.f32.s32 %v2984_v9 }
 0x66c   :  { %v2988_v38 = vadd.s32 %v2987_v11, %v2985_v2 }
 0x66e   :  { %vm2989_vm9 = vcmp.eq.s32.totalorder %v4164_v33, %v2988_v38 }
 0x66f   :  { %v2990_v7 = vsel %vm2989_vm9, -3e+38, %v4189_v62  ;;  %v2993_v62 = vsel %vm2923_vm12, %v3999_v18, %v4167_v43 }
 0x670   :  { %2991 = vmax.xlane.f32.xlu1 %v2990_v7 }
 0x6f9   :  { %v2992_v19 = vpop.xlane.xlu1 %2991 }
 0x6fa   :  { %vm2994_vm13 = vcmp.lt.f32.partialorder %v4167_v43, %v2992_v19 }
 0x6fb   :  { %vm2995_vm14 = vmand %vm2920_vm0, %vm2994_vm13 }
 0x6fc   :  { %v2996_v20 = vsel %vm2995_vm14, 0.0, %v2993_v62 }
 0x6fd   :  { %2997 = vst [vmem:[#allocation8] sm:$0xff] %v2996_v20 }
 0x6fe   :  { %4072 = shalt.err (!%p4069_p5)
}
 0x6ff   :  { %3007 = dma.vmem_to_hbm [thread:$0]  %s3005_s2, 768, %s4237_s3, [#allocation4]  }
 0x700   :  { %4085 = dma.done.wait [#allocation4], 768  }
 0x701   :  { %4086 = vsyncadd [#allocation4], 4294966528 }
 0x702   :  { %3011 = vsyncpa [#allocation3], 1 }
 0x703   :  { %3012 = vsyncpa [#allocation6], 1 }
 0x704   :  { %3013 = vsyncpa [#allocation4], 1 }

</bundles_post_ra>
